<compile_context>
chip_gen: v5e
topology: v5e:2x2
jax: 0.10.0
libtpu: 0.0.40
codegen_flags: <defaults>
</compile_context>

<pallas_src>
import jax
import jax.numpy as jnp
from jax import lax
from jax.experimental import pallas as pl
from jax.experimental.pallas import tpu as pltpu


# --------------------------------------------------------------------------- #
# Helpers (padding / tile sizing / VMEM budgeting)
# --------------------------------------------------------------------------- #

def _round_up(v, m):
    return (v + m - 1) // m * m


def _pad_gates(w, H, Hp):
    """(..., 4H) gate-fused [i, f, g, o] -> (..., 4Hp); zero-pad each gate's H columns."""
    if Hp == H:
        return w
    lead = w.shape[:-1]
    w4 = w.reshape(lead + (4, H))
    w4 = jnp.pad(w4, [(0, 0)] * len(lead) + [(0, 0), (0, Hp - H)])
    return w4.reshape(lead + (4 * Hp,))


def _vmem_limit(nbytes):
    # Explicit scoped-VMEM limit derived from the chosen tiles (2x headroom for compiler
    # temporaries), capped at 64 MiB so the same setting is valid on v7x (64 MiB / TC).
    return int(min(max(2 * nbytes, 8 << 20), 64 << 20))


def _lstm_vmem_bytes(Tc, Bp, E, Hp):
    n = 2 * 2 * Tc * Bp * E * 2              # x chunks (fwd + bwd), double-buffered, bf16
    n += 2 * Tc * Bp * 4                     # bwd valid chunk, double-buffered, f32
    n += 2 * 2 * Tc * Bp * Hp * 2            # y chunks (fwd + bwd), double-buffered, bf16
    n += 2 * 2 * (E + Hp) * 4 * Hp * 2       # fused weights (both dirs, bf16, 2 buffers)
    n += 2 * 2 * 4 * Hp * 4                  # bias (f32)
    n += 4 * Bp * Hp * 4                     # persistent h/c scratch (f32)
    n += 2 * Tc * Bp * 4 * Hp * 4            # per-chunk input-projection scratch (f32)
    return n


def _attn_vmem_bytes(S_pad, Bt, Hp):
    n = 2 * 2 * S_pad * Bt * Hp * 2          # yf / yb blocks, double-buffered, bf16
    n += 2 * 2 * S_pad * Bt * 4              # valid / pad blocks, f32
    n += 4 * S_pad * Bt * Hp * 4             # headroom for in-kernel f32 temporaries
    return n


def _choose_seq_chunk(S, Bp, E, Hp, budget_bytes=16 << 20):
    """Largest S-chunk whose resident VMEM (x/y blocks + xproj scratch) fits the budget."""
    per_t = Bp * (2 * 2 * E * 2 + 2 * 4 + 2 * 2 * Hp * 2 + 2 * 4 * Hp * 4)
    return int(max(1, min(S, budget_bytes // max(per_t, 1))))


# --------------------------------------------------------------------------- #
# Pallas kernels
# --------------------------------------------------------------------------- #

def _bilstm_kernel(xf_ref, xb_ref, vb_ref, wih_ref, whh_ref, b_ref,
                   yf_ref, yb_ref, hf, cf, hb, cb, xpf, xpb):
    """Fused bidirectional LSTM, one S-chunk per grid step (grid=(num_chunks,), 'arbitrary').

    xf_ref : (Tc*B, E)  bf16  forward chunk c of the flattened time-major input
    xb_ref : (Tc*B, E)  bf16  backward chunk nc-1-c (reversed chunk order via index_map)
    vb_ref : (Tc, B, 1) f32   validity of the backward chunk (1.0 where t < length)
    wih_ref: (2, E, 4H) bf16  gate-fused input weights, gate order [i, f, g, o]
    whh_ref: (2, H, 4H) bf16  gate-fused recurrent weights
    b_ref  : (2, 1, 4H) f32   combined bias (b_ih + b_hh)
    yf_ref : (Tc, B, H) bf16  forward hidden states of chunk c
    yb_ref : (Tc, B, H) bf16  backward hidden states of chunk nc-1-c
    scratch: hf, cf, hb, cb (B, H) f32 persistent state; xpf, xpb (Tc, B, 4H) f32.
    """
    Tc, B, Hp4 = xpf.shape
    Hp = Hp4 // 4

    @pl.when(pl.program_id(0) == 0)
    def _():
        hf[...] = jnp.zeros_like(hf)
        cf[...] = jnp.zeros_like(cf)
        hb[...] = jnp.zeros_like(hb)
        cb[...] = jnp.zeros_like(cb)

    # Per-chunk hoisted input projection: one MXU matmul per direction, f32 accumulation,
    # stored as a 3-D scratch so the per-timestep read is a tile-aligned leading index.
    xpf[...] = (jnp.dot(xf_ref[...], wih_ref[0], preferred_element_type=jnp.float32)
                + b_ref[0]).reshape(Tc, B, Hp4)
    xpb[...] = (jnp.dot(xb_ref[...], wih_ref[1], preferred_element_type=jnp.float32)
                + b_ref[1]).reshape(Tc, B, Hp4)

    w_hh_f = whh_ref[0]
    w_hh_b = whh_ref[1]

    def lstm_cell(g, c):
        i_g = jax.nn.sigmoid(g[:, 0 * Hp:1 * Hp])
        f_g = jax.nn.sigmoid(g[:, 1 * Hp:2 * Hp])
        g_g = jnp.tanh(g[:, 2 * Hp:3 * Hp])
        o_g = jax.nn.sigmoid(g[:, 3 * Hp:4 * Hp])
        c_new = f_g * c + i_g * g_g
        h_new = o_g * jnp.tanh(c_new)
        return h_new, c_new

    def step(i, carry):
        tb = Tc - 1 - i                       # backward direction walks its chunk reversed

        h_f, c_f = hf[...], cf[...]
        h_b, c_b = hb[...], cb[...]

        # Two independent recurrent dots per iteration -> interleaved on single-TC chips.
        gf = xpf[i] + jnp.dot(h_f.astype(jnp.bfloat16), w_hh_f,
                              preferred_element_type=jnp.float32)
        gb = xpb[tb] + jnp.dot(h_b.astype(jnp.bfloat16), w_hh_b,
                               preferred_element_type=jnp.float32)

        hf_new, cf_new = lstm_cell(gf, c_f)
        hb_new, cb_new = lstm_cell(gb, c_b)

        # Forward: ungated (padded timesteps are zeroed later by the attention kernel).
        hf[...] = hf_new
        cf[...] = cf_new
        yf_ref[i] = hf_new.astype(yf_ref.dtype)

        # Backward: validity-gated so tail padding is skipped (pack_padded_sequence
        # semantics); gating folded into arithmetic instead of two selects.
        v = vb_ref[tb]                        # (B, 1)
        hb_g = h_b + v * (hb_new - h_b)
        cb_g = c_b + v * (cb_new - c_b)
        hb[...] = hb_g
        cb[...] = cb_g
        yb_ref[tb] = hb_g.astype(yb_ref.dtype)
        return carry

    lax.fori_loop(0, Tc, step, 0)


def _attn_pred_kernel(yf_ref, yb_ref, valid_ref, pad_ref, attn_w_ref, attn_b_ref,
                      pred_w_ref, pred_b_ref, out_ref):
    """Fused epilogue for one B-tile: fwd+bwd sum, pad zero-fill, attention logits,
    masked softmax over S, attention pooling, Linear(H, 1) and sigmoid.

    yf_ref/yb_ref: (S, Bt, H) bf16;  valid_ref/pad_ref: (S, Bt, 1) f32
    attn_w (1,1,H), attn_b (1,1,1), pred_w (1,H), pred_b (1,1);  out_ref (Bt, 1) f32.
    """
    v = valid_ref[...]
    y = (yf_ref[...].astype(jnp.float32) + yb_ref[...].astype(jnp.float32)) * v   # (S,Bt,H)

    logits = jnp.sum(y * attn_w_ref[...], axis=-1, keepdims=True) + attn_b_ref[...]
    logits = jnp.where(pad_ref[...] > 0.5, jnp.float32(-1e12), logits)            # (S,Bt,1)

    m = jnp.max(logits, axis=0, keepdims=True)
    e = jnp.exp(logits - m)
    denom = jnp.sum(e, axis=0)                                                    # (Bt, 1)
    feature = jnp.sum(e * y, axis=0) / denom                                      # (Bt, H)

    score = jnp.sum(feature * pred_w_ref[...], axis=-1, keepdims=True)            # (Bt, 1)
    out_ref[...] = jax.nn.sigmoid(score + pred_b_ref[...])


# --------------------------------------------------------------------------- #
# Wrappers
# --------------------------------------------------------------------------- #

def bidir_lstm_pallas(x2, valid, wih, whh, b, *, S_pad, Bp, Tc):
    """x2: (S_pad*Bp, E) bf16; valid: (S_pad, Bp, 1) f32; weights gate-fused & H-padded."""
    E = x2.shape[-1]
    Hp4 = whh.shape[-1]
    Hp = Hp4 // 4
    nc = S_pad // Tc
    vmem = _vmem_limit(_lstm_vmem_bytes(Tc, Bp, E, Hp))

    return pl.pallas_call(
        _bilstm_kernel,
        out_shape=(jax.ShapeDtypeStruct((S_pad, Bp, Hp), jnp.bfloat16),
                   jax.ShapeDtypeStruct((S_pad, Bp, Hp), jnp.bfloat16)),
        grid=(nc,),
        in_specs=[
            pl.BlockSpec((Tc * Bp, E), lambda c: (c, 0)),             # x, forward chunks
            pl.BlockSpec((Tc * Bp, E), lambda c: (nc - 1 - c, 0)),    # x, backward chunks
            pl.BlockSpec((Tc, Bp, 1), lambda c: (nc - 1 - c, 0, 0)),  # valid, backward chunks
            pl.BlockSpec((2, E, Hp4), lambda c: (0, 0, 0)),
            pl.BlockSpec((2, Hp, Hp4), lambda c: (0, 0, 0)),
            pl.BlockSpec((2, 1, Hp4), lambda c: (0, 0, 0)),
        ],
        out_specs=(
            pl.BlockSpec((Tc, Bp, Hp), lambda c: (c, 0, 0)),
            pl.BlockSpec((Tc, Bp, Hp), lambda c: (nc - 1 - c, 0, 0)),
        ),
        scratch_shapes=[
            pltpu.VMEM((Bp, Hp), jnp.float32),        # h fwd
            pltpu.VMEM((Bp, Hp), jnp.float32),        # c fwd
            pltpu.VMEM((Bp, Hp), jnp.float32),        # h bwd
            pltpu.VMEM((Bp, Hp), jnp.float32),        # c bwd
            pltpu.VMEM((Tc, Bp, Hp4), jnp.float32),   # xproj fwd (per chunk)
            pltpu.VMEM((Tc, Bp, Hp4), jnp.float32),   # xproj bwd (per chunk)
        ],
        compiler_params=pltpu.CompilerParams(
            dimension_semantics=("arbitrary",),       # h/c carried across S-chunks
            vmem_limit_bytes=vmem),
    )(x2, x2, valid, wih, whh, b)


def attn_predict_pallas(yf, yb, valid, pad_m, attn_w, attn_b, pred_w, pred_b, *, Bt):
    S_pad, Bp, Hp = yf.shape
    nb = Bp // Bt
    vmem = _vmem_limit(_attn_vmem_bytes(S_pad, Bt, Hp))
    # TODO(synk): for extremely long sequences where one B-tile's full-S block exceeds
    #             VMEM, switch this to S-tiling with an online-softmax accumulator.
    return pl.pallas_call(
        _attn_pred_kernel,
        out_shape=jax.ShapeDtypeStruct((Bp, 1), jnp.float32),
        grid=(nb,),
        in_specs=[
            pl.BlockSpec((S_pad, Bt, Hp), lambda i: (0, i, 0)),
            pl.BlockSpec((S_pad, Bt, Hp), lambda i: (0, i, 0)),
            pl.BlockSpec((S_pad, Bt, 1), lambda i: (0, i, 0)),
            pl.BlockSpec((S_pad, Bt, 1), lambda i: (0, i, 0)),
            pl.BlockSpec((1, 1, Hp), lambda i: (0, 0, 0)),
            pl.BlockSpec((1, 1, 1), lambda i: (0, 0, 0)),
            pl.BlockSpec((1, Hp), lambda i: (0, 0)),
            pl.BlockSpec((1, 1), lambda i: (0, 0)),
        ],
        out_specs=pl.BlockSpec((Bt, 1), lambda i: (i, 0)),
        compiler_params=pltpu.CompilerParams(
            dimension_semantics=("parallel",),
            vmem_limit_bytes=vmem),
    )(yf, yb, valid, pad_m,
      attn_w.reshape(1, 1, Hp), attn_b.reshape(1, 1, 1),
      pred_w.reshape(1, Hp), pred_b.reshape(1, 1))


def sen_semantic_forward(params, x, lengths, seq_mask, *, seq_chunk=None):
    """x: (S,B,E) f32; lengths: (B,) int32 (padding at the tail of every sequence);
    seq_mask: (B,S) bool, True = padded.  Returns (B, 1) f32."""
    S, B, E = x.shape
    H = params["attn_w"].shape[0]
    Hp = _round_up(H, 128)                         # lane-dense gates / y stores

    if B <= 128:
        Bp = _round_up(B, 8)
        Bt = Bp
    else:
        Bp = _round_up(B, 128)
        Bt = 128

    Tc = seq_chunk if seq_chunk is not None else _choose_seq_chunk(S, Bp, E, Hp)
    Tc = max(1, min(int(Tc), S))
    S_pad = _round_up(S, Tc)

    # ---- pad activations (tail padding only -> pack_padded_sequence semantics) ----
    xp = jnp.pad(x, ((0, S_pad - S), (0, Bp - B), (0, 0)))
    x2 = xp.astype(jnp.bfloat16).reshape(S_pad * Bp, E)

    lengths_p = jnp.pad(lengths.astype(jnp.int32), (0, Bp - B))
    valid = (jnp.arange(S_pad)[:, None] < lengths_p[None, :]).astype(jnp.float32)[:, :, None]
    pad_m = jnp.pad(seq_mask.T.astype(jnp.float32),
                    ((0, S_pad - S), (0, Bp - B)), constant_values=1.0)[:, :, None]

    # ---- pad weights H -> Hp (zero-padded lanes stay exactly zero through the LSTM) ----
    wih = _pad_gates(params["wih"], H, Hp).astype(jnp.bfloat16)                  # (2, E, 4Hp)
    whh = _pad_gates(params["whh"], H, Hp)
    whh = jnp.pad(whh, ((0, 0), (0, Hp - H), (0, 0))).astype(jnp.bfloat16)       # (2, Hp, 4Hp)
    b = _pad_gates(params["b"], H, Hp).astype(jnp.float32)                       # (2, 1, 4Hp)
    attn_w = jnp.pad(params["attn_w"], (0, Hp - H)).astype(jnp.float32)
    pred_w = jnp.pad(params["pred_w"], (0, Hp - H)).astype(jnp.float32)

    # em_dropout: identity (eval mode).
    yf, yb = bidir_lstm_pallas(x2, valid, wih, whh, b, S_pad=S_pad, Bp=Bp, Tc=Tc)
    out = attn_predict_pallas(yf, yb, valid, pad_m, attn_w, params["attn_b"],
                              pred_w, params["pred_b"], Bt=Bt)
    return out[:B]


# --------------------------------------------------------------------------- #
# Deterministic parameter init (PyTorch-style U(-1/sqrt(H), 1/sqrt(H)))
# --------------------------------------------------------------------------- #

def init_params(key, E, H):
    k = 1.0 / float(H) ** 0.5
    keys = jax.random.split(key, 8)

    def u(kk, shape):
        return jax.random.uniform(kk, shape, jnp.float32, -k, k)

    wih = u(keys[0], (2, E, 4 * H))                             # gate order [i, f, g, o]
    whh = u(keys[1], (2, H, 4 * H))
    b = u(keys[2], (2, 1, 4 * H)) + u(keys[3], (2, 1, 4 * H))   # b_ih + b_hh
    attn_w = u(keys[4], (H,))
    attn_b = u(keys[5], (1,))
    pred_w = u(keys[6], (H,))
    pred_b = u(keys[7], (1,))
    return dict(wih=wih, whh=whh, b=b, attn_w=attn_w, attn_b=attn_b,
                pred_w=pred_w, pred_b=pred_b)


# --------------------------------------------------------------------------- #
# Pure-JAX f32 reference (same math) for correctness check
# --------------------------------------------------------------------------- #

def reference_forward(params, x, lengths, seq_mask):
    S, B, E = x.shape
    H = params["attn_w"].shape[0]

    def run_dir(xdir, wih, whh, b):
        def step(carry, xt):
            h, c = carry
            g = jnp.dot(xt, wih) + jnp.dot(h, whh) + b
            i = jax.nn.sigmoid(g[:, :H])
            f = jax.nn.sigmoid(g[:, H:2 * H])
            gg = jnp.tanh(g[:, 2 * H:3 * H])
            o = jax.nn.sigmoid(g[:, 3 * H:])
            c = f * c + i * gg
            h = o * jnp.tanh(c)
            return (h, c), h
        init = (jnp.zeros((B, H), jnp.float32), jnp.zeros((B, H), jnp.float32))
        _, ys = lax.scan(step, init, xdir)
        return ys

    t_idx = jnp.arange(S)[:, None]
    L = lengths[None, :]
    valid = t_idx < L
    rev_idx = jnp.where(valid, L - 1 - t_idx, t_idx)
    x_rev = jnp.take_along_axis(x, rev_idx[:, :, None], axis=0)

    y_f = run_dir(x, params["wih"][0], params["whh"][0], params["b"][0])
    y_b = jnp.take_along_axis(
        run_dir(x_rev, params["wih"][1], params["whh"][1], params["b"][1]),
        rev_idx[:, :, None], axis=0)
    y = (y_f + y_b) * valid[:, :, None].astype(jnp.float32)              # (S, B, H)

    logits = jnp.sum(y * params["attn_w"][None, None, :], axis=-1).T     # (B, S)
    logits = logits + params["attn_b"][0]
    logits = jnp.where(seq_mask, -1e12, logits)
    attn = jax.nn.softmax(logits, axis=1)
    feature = jnp.einsum("bs,sbh->bh", attn, y)
    score = feature @ params["pred_w"] + params["pred_b"]
    return jax.nn.sigmoid(score)[:, None]


# --------------------------------------------------------------------------- #

if __name__ == "__main__":
    # Small shapes chosen to exercise every padding/tiling path:
    #   H=64 -> Hp=128, B=6 -> Bp=8, S=10 with seq_chunk=4 -> S_pad=12 (3 chunks).
    S, B, E, H = 10, 6, 24, 64

    key = jax.random.PRNGKey(0)
    kx, kp = jax.random.split(key)
    params = init_params(kp, E, H)

    lengths = jnp.array([10, 9, 7, 5, 3, 1], dtype=jnp.int32)     # sorted desc, tail padding
    assert int(lengths.min()) >= 1                                # zero-length seq -> uniform attn
    seq_mask = jnp.arange(S)[None, :] >= lengths[:, None]         # (B, S), True = padded

    x = jax.random.normal(kx, (S, B, E), dtype=jnp.float32)
    x = x * (~seq_mask).T[:, :, None].astype(jnp.float32)         # zero padded-token embeddings

    out = sen_semantic_forward(params, x, lengths, seq_mask, seq_chunk=4)
    out = jax.block_until_ready(out)

    ref = reference_forward(params, x, lengths, seq_mask)
    assert out.shape == (B, 1)
    # bf16 storage/matmuls in the kernel vs f32 reference -> looser tolerance.
    assert jnp.allclose(out, ref, atol=2e-2), (out, ref)

    print("KERNEL_OK")
</pallas_src>

<mosaic_0001>
module attributes {stable_mosaic.version = 11 : i64} {
  func.func @_bilstm_kernel(%arg0: i32, %arg1: memref<32x24xbf16, #tpu.memory_space<vmem>>, %arg2: memref<32x24xbf16, #tpu.memory_space<vmem>>, %arg3: memref<4x8x1xf32, #tpu.memory_space<vmem>>, %arg4: memref<2x24x512xbf16, #tpu.memory_space<vmem>>, %arg5: memref<2x128x512xbf16, #tpu.memory_space<vmem>>, %arg6: memref<2x1x512xf32, #tpu.memory_space<vmem>>, %arg7: memref<4x8x128xbf16, #tpu.memory_space<vmem>>, %arg8: memref<4x8x128xbf16, #tpu.memory_space<vmem>>, %arg9: memref<8x128xf32, #tpu.memory_space<vmem>>, %arg10: memref<8x128xf32, #tpu.memory_space<vmem>>, %arg11: memref<8x128xf32, #tpu.memory_space<vmem>>, %arg12: memref<8x128xf32, #tpu.memory_space<vmem>>, %arg13: memref<4x8x512xf32, #tpu.memory_space<vmem>>, %arg14: memref<4x8x512xf32, #tpu.memory_space<vmem>>) attributes {dimension_semantics = [#tpu.dimension_semantics<arbitrary>], iteration_bounds = array<i64: 3>, scalar_prefetch = 0 : i64, scratch_operands = 6 : i64, tpu.core_type = #tpu.core_type<tc>, window_params = [{transform_indices = @transform_0, window_bounds = array<i64: 32, 24>}, {transform_indices = @transform_1, window_bounds = array<i64: 32, 24>}, {transform_indices = @transform_2, window_bounds = array<i64: 4, 8, 1>}, {pipeline_mode = #tpu.pipeline_mode<synchronous>, transform_indices = @transform_3, window_bounds = array<i64: 2, 24, 512>}, {pipeline_mode = #tpu.pipeline_mode<synchronous>, transform_indices = @transform_4, window_bounds = array<i64: 2, 128, 512>}, {pipeline_mode = #tpu.pipeline_mode<synchronous>, transform_indices = @transform_5, window_bounds = array<i64: 2, 1, 512>}, {transform_indices = @transform_6, window_bounds = array<i64: 4, 8, 128>}, {transform_indices = @transform_7, window_bounds = array<i64: 4, 8, 128>}]} {
    %c0_i32 = arith.constant 0 : i32
    %0 = arith.cmpi eq, %arg0, %c0_i32 : i32
    %1 = arith.extui %0 : i1 to i32
    %c0_i32_0 = arith.constant 0 : i32
    %2 = arith.cmpi ne, %1, %c0_i32_0 : i32
    scf.if %2 {
      %cst_30 = arith.constant 0.000000e+00 : f32
      %28 = vector.broadcast %cst_30 : f32 to vector<8x128xf32>
      %c0_31 = arith.constant 0 : index
      %c0_32 = arith.constant 0 : index
      %29 = vector.load %arg9[%c0_31, %c0_32] : memref<8x128xf32, #tpu.memory_space<vmem>>, vector<8x128xf32>
      tpu.vector_store %arg9[%c0_31, %c0_32], %28 {strides = array<i32>} : memref<8x128xf32, #tpu.memory_space<vmem>>, vector<8x128xf32>,
      %cst_33 = arith.constant 0.000000e+00 : f32
      %30 = vector.broadcast %cst_33 : f32 to vector<8x128xf32>
      %c0_34 = arith.constant 0 : index
      %c0_35 = arith.constant 0 : index
      %31 = vector.load %arg10[%c0_34, %c0_35] : memref<8x128xf32, #tpu.memory_space<vmem>>, vector<8x128xf32>
      tpu.vector_store %arg10[%c0_34, %c0_35], %30 {strides = array<i32>} : memref<8x128xf32, #tpu.memory_space<vmem>>, vector<8x128xf32>,
      %cst_36 = arith.constant 0.000000e+00 : f32
      %32 = vector.broadcast %cst_36 : f32 to vector<8x128xf32>
      %c0_37 = arith.constant 0 : index
      %c0_38 = arith.constant 0 : index
      %33 = vector.load %arg11[%c0_37, %c0_38] : memref<8x128xf32, #tpu.memory_space<vmem>>, vector<8x128xf32>
      tpu.vector_store %arg11[%c0_37, %c0_38], %32 {strides = array<i32>} : memref<8x128xf32, #tpu.memory_space<vmem>>, vector<8x128xf32>,
      %cst_39 = arith.constant 0.000000e+00 : f32
      %34 = vector.broadcast %cst_39 : f32 to vector<8x128xf32>
      %c0_40 = arith.constant 0 : index
      %c0_41 = arith.constant 0 : index
      %35 = vector.load %arg12[%c0_40, %c0_41] : memref<8x128xf32, #tpu.memory_space<vmem>>, vector<8x128xf32>
      tpu.vector_store %arg12[%c0_40, %c0_41], %34 {strides = array<i32>} : memref<8x128xf32, #tpu.memory_space<vmem>>, vector<8x128xf32>,
    } else {
    }
    %c0 = arith.constant 0 : index
    %c0_1 = arith.constant 0 : index
    %3 = vector.load %arg1[%c0, %c0_1] : memref<32x24xbf16, #tpu.memory_space<vmem>>, vector<32x24xbf16>
    %c0_2 = arith.constant 0 : index
    %c0_3 = arith.constant 0 : index
    %c0_4 = arith.constant 0 : index
    %4 = vector.load %arg4[%c0_2, %c0_3, %c0_4] : memref<2x24x512xbf16, #tpu.memory_space<vmem>>, vector<1x24x512xbf16>
    %5 = vector.shape_cast %4 : vector<1x24x512xbf16> to vector<24x512xbf16>
    %cst = arith.constant dense<0.000000e+00> : vector<32x512xf32>
    %6 = tpu.matmul %3, %5, %cst {dimension_numbers = #tpu.dot_dimension_numbers<[1], [0], [0], [1], [0, 0, 1, 1], [], []>} : vector<32x24xbf16>, vector<24x512xbf16>, vector<32x512xf32> -> vector<32x512xf32>
    %c0_5 = arith.constant 0 : index
    %c0_6 = arith.constant 0 : index
    %c0_7 = arith.constant 0 : index
    %7 = vector.load %arg6[%c0_5, %c0_6, %c0_7] : memref<2x1x512xf32, #tpu.memory_space<vmem>>, vector<1x1x512xf32>
    %8 = vector.shape_cast %7 : vector<1x1x512xf32> to vector<1x512xf32>
    %9 = vector.broadcast %8 : vector<1x512xf32> to vector<32x512xf32>
    %10 = arith.addf %6, %9 : vector<32x512xf32>
    %11 = vector.shape_cast %10 : vector<32x512xf32> to vector<4x8x512xf32>
    %c0_8 = arith.constant 0 : index
    %c0_9 = arith.constant 0 : index
    %c0_10 = arith.constant 0 : index
    %12 = vector.load %arg13[%c0_8, %c0_9, %c0_10] : memref<4x8x512xf32, #tpu.memory_space<vmem>>, vector<4x8x512xf32>
    tpu.vector_store %arg13[%c0_8, %c0_9, %c0_10], %11 {strides = array<i32>} : memref<4x8x512xf32, #tpu.memory_space<vmem>>, vector<4x8x512xf32>,
    %c0_11 = arith.constant 0 : index
    %c0_12 = arith.constant 0 : index
    %13 = vector.load %arg2[%c0_11, %c0_12] : memref<32x24xbf16, #tpu.memory_space<vmem>>, vector<32x24xbf16>
    %c1 = arith.constant 1 : index
    %c0_13 = arith.constant 0 : index
    %c0_14 = arith.constant 0 : index
    %14 = vector.load %arg4[%c1, %c0_13, %c0_14] : memref<2x24x512xbf16, #tpu.memory_space<vmem>>, vector<1x24x512xbf16>
    %15 = vector.shape_cast %14 : vector<1x24x512xbf16> to vector<24x512xbf16>
    %cst_15 = arith.constant dense<0.000000e+00> : vector<32x512xf32>
    %16 = tpu.matmul %13, %15, %cst_15 {dimension_numbers = #tpu.dot_dimension_numbers<[1], [0], [0], [1], [0, 0, 1, 1], [], []>} : vector<32x24xbf16>, vector<24x512xbf16>, vector<32x512xf32> -> vector<32x512xf32>
    %c1_16 = arith.constant 1 : index
    %c0_17 = arith.constant 0 : index
    %c0_18 = arith.constant 0 : index
    %17 = vector.load %arg6[%c1_16, %c0_17, %c0_18] : memref<2x1x512xf32, #tpu.memory_space<vmem>>, vector<1x1x512xf32>
    %18 = vector.shape_cast %17 : vector<1x1x512xf32> to vector<1x512xf32>
    %19 = vector.broadcast %18 : vector<1x512xf32> to vector<32x512xf32>
    %20 = arith.addf %16, %19 : vector<32x512xf32>
    %21 = vector.shape_cast %20 : vector<32x512xf32> to vector<4x8x512xf32>
    %c0_19 = arith.constant 0 : index
    %c0_20 = arith.constant 0 : index
    %c0_21 = arith.constant 0 : index
    %22 = vector.load %arg14[%c0_19, %c0_20, %c0_21] : memref<4x8x512xf32, #tpu.memory_space<vmem>>, vector<4x8x512xf32>
    tpu.vector_store %arg14[%c0_19, %c0_20, %c0_21], %21 {strides = array<i32>} : memref<4x8x512xf32, #tpu.memory_space<vmem>>, vector<4x8x512xf32>,
    %c0_22 = arith.constant 0 : index
    %c0_23 = arith.constant 0 : index
    %c0_24 = arith.constant 0 : index
    %23 = vector.load %arg5[%c0_22, %c0_23, %c0_24] : memref<2x128x512xbf16, #tpu.memory_space<vmem>>, vector<1x128x512xbf16>
    %24 = vector.shape_cast %23 : vector<1x128x512xbf16> to vector<128x512xbf16>
    %c1_25 = arith.constant 1 : index
    %c0_26 = arith.constant 0 : index
    %c0_27 = arith.constant 0 : index
    %25 = vector.load %arg5[%c1_25, %c0_26, %c0_27] : memref<2x128x512xbf16, #tpu.memory_space<vmem>>, vector<1x128x512xbf16>
    %26 = vector.shape_cast %25 : vector<1x128x512xbf16> to vector<128x512xbf16>
    %c0_i32_28 = arith.constant 0 : i32
    %c4_i32 = arith.constant 4 : i32
    %27 = arith.addi %c0_i32_28, %c4_i32 : i32
    %c1_i32 = arith.constant 1 : i32
    scf.for %arg15 = %c0_i32_28 to %27 step %c1_i32  : i32 {
      %c3_i32 = arith.constant 3 : i32
      %28 = arith.subi %c3_i32, %arg15 : i32
      %c0_30 = arith.constant 0 : index
      %c0_31 = arith.constant 0 : index
      %29 = vector.load %arg9[%c0_30, %c0_31] : memref<8x128xf32, #tpu.memory_space<vmem>>, vector<8x128xf32>
      %c0_32 = arith.constant 0 : index
      %c0_33 = arith.constant 0 : index
      %30 = vector.load %arg10[%c0_32, %c0_33] : memref<8x128xf32, #tpu.memory_space<vmem>>, vector<8x128xf32>
      %c0_34 = arith.constant 0 : index
      %c0_35 = arith.constant 0 : index
      %31 = vector.load %arg11[%c0_34, %c0_35] : memref<8x128xf32, #tpu.memory_space<vmem>>, vector<8x128xf32>
      %c0_36 = arith.constant 0 : index
      %c0_37 = arith.constant 0 : index
      %32 = vector.load %arg12[%c0_36, %c0_37] : memref<8x128xf32, #tpu.memory_space<vmem>>, vector<8x128xf32>
      %33 = arith.index_cast %arg15 : i32 to index
      %c0_38 = arith.constant 0 : index
      %c0_39 = arith.constant 0 : index
      %34 = vector.load %arg13[%33, %c0_38, %c0_39] : memref<4x8x512xf32, #tpu.memory_space<vmem>>, vector<1x8x512xf32>
      %35 = vector.shape_cast %34 : vector<1x8x512xf32> to vector<8x512xf32>
      %36 = arith.truncf %29 : vector<8x128xf32> to vector<8x128xbf16>
      %cst_40 = arith.constant dense<0.000000e+00> : vector<8x512xf32>
      %37 = tpu.matmul %36, %24, %cst_40 {dimension_numbers = #tpu.dot_dimension_numbers<[1], [0], [0], [1], [0, 0, 1, 1], [], []>} : vector<8x128xbf16>, vector<128x512xbf16>, vector<8x512xf32> -> vector<8x512xf32>
      %38 = arith.addf %35, %37 : vector<8x512xf32>
      %39 = arith.index_cast %28 : i32 to index
      %c0_41 = arith.constant 0 : index
      %c0_42 = arith.constant 0 : index
      %40 = vector.load %arg14[%39, %c0_41, %c0_42] : memref<4x8x512xf32, #tpu.memory_space<vmem>>, vector<1x8x512xf32>
      %41 = vector.shape_cast %40 : vector<1x8x512xf32> to vector<8x512xf32>
      %42 = arith.truncf %31 : vector<8x128xf32> to vector<8x128xbf16>
      %cst_43 = arith.constant dense<0.000000e+00> : vector<8x512xf32>
      %43 = tpu.matmul %42, %26, %cst_43 {dimension_numbers = #tpu.dot_dimension_numbers<[1], [0], [0], [1], [0, 0, 1, 1], [], []>} : vector<8x128xbf16>, vector<128x512xbf16>, vector<8x512xf32> -> vector<8x512xf32>
      %44 = arith.addf %41, %43 : vector<8x512xf32>
      %45 = vector.extract_strided_slice %38 {offsets = [0, 0], sizes = [8, 128], strides = [1, 1]} : vector<8x512xf32> to vector<8x128xf32>
      %46 = arith.negf %45 : vector<8x128xf32>
      %47 = math.exp %46 : vector<8x128xf32>
      %cst_44 = arith.constant 1.000000e+00 : f32
      %48 = vector.broadcast %cst_44 : f32 to vector<8x128xf32>
      %49 = arith.addf %48, %47 : vector<8x128xf32>
      %50 = arith.divf %48, %49 : vector<8x128xf32>
      %51 = vector.extract_strided_slice %38 {offsets = [0, 128], sizes = [8, 128], strides = [1, 1]} : vector<8x512xf32> to vector<8x128xf32>
      %52 = arith.negf %51 : vector<8x128xf32>
      %53 = math.exp %52 : vector<8x128xf32>
      %cst_45 = arith.constant 1.000000e+00 : f32
      %54 = vector.broadcast %cst_45 : f32 to vector<8x128xf32>
      %55 = arith.addf %54, %53 : vector<8x128xf32>
      %56 = arith.divf %54, %55 : vector<8x128xf32>
      %57 = vector.extract_strided_slice %38 {offsets = [0, 256], sizes = [8, 128], strides = [1, 1]} : vector<8x512xf32> to vector<8x128xf32>
      %58 = math.tanh %57 : vector<8x128xf32>
      %59 = vector.extract_strided_slice %38 {offsets = [0, 384], sizes = [8, 128], strides = [1, 1]} : vector<8x512xf32> to vector<8x128xf32>
      %60 = arith.negf %59 : vector<8x128xf32>
      %61 = math.exp %60 : vector<8x128xf32>
      %cst_46 = arith.constant 1.000000e+00 : f32
      %62 = vector.broadcast %cst_46 : f32 to vector<8x128xf32>
      %63 = arith.addf %62, %61 : vector<8x128xf32>
      %64 = arith.divf %62, %63 : vector<8x128xf32>
      %65 = arith.mulf %56, %30 : vector<8x128xf32>
      %66 = arith.mulf %50, %58 : vector<8x128xf32>
      %67 = arith.addf %65, %66 : vector<8x128xf32>
      %68 = math.tanh %67 : vector<8x128xf32>
      %69 = arith.mulf %64, %68 : vector<8x128xf32>
      %70 = vector.extract_strided_slice %44 {offsets = [0, 0], sizes = [8, 128], strides = [1, 1]} : vector<8x512xf32> to vector<8x128xf32>
      %71 = arith.negf %70 : vector<8x128xf32>
      %72 = math.exp %71 : vector<8x128xf32>
      %cst_47 = arith.constant 1.000000e+00 : f32
      %73 = vector.broadcast %cst_47 : f32 to vector<8x128xf32>
      %74 = arith.addf %73, %72 : vector<8x128xf32>
      %75 = arith.divf %73, %74 : vector<8x128xf32>
      %76 = vector.extract_strided_slice %44 {offsets = [0, 128], sizes = [8, 128], strides = [1, 1]} : vector<8x512xf32> to vector<8x128xf32>
      %77 = arith.negf %76 : vector<8x128xf32>
      %78 = math.exp %77 : vector<8x128xf32>
      %cst_48 = arith.constant 1.000000e+00 : f32
      %79 = vector.broadcast %cst_48 : f32 to vector<8x128xf32>
      %80 = arith.addf %79, %78 : vector<8x128xf32>
      %81 = arith.divf %79, %80 : vector<8x128xf32>
      %82 = vector.extract_strided_slice %44 {offsets = [0, 256], sizes = [8, 128], strides = [1, 1]} : vector<8x512xf32> to vector<8x128xf32>
      %83 = math.tanh %82 : vector<8x128xf32>
      %84 = vector.extract_strided_slice %44 {offsets = [0, 384], sizes = [8, 128], strides = [1, 1]} : vector<8x512xf32> to vector<8x128xf32>
      %85 = arith.negf %84 : vector<8x128xf32>
      %86 = math.exp %85 : vector<8x128xf32>
      %cst_49 = arith.constant 1.000000e+00 : f32
      %87 = vector.broadcast %cst_49 : f32 to vector<8x128xf32>
      %88 = arith.addf %87, %86 : vector<8x128xf32>
      %89 = arith.divf %87, %88 : vector<8x128xf32>
      %90 = arith.mulf %81, %32 : vector<8x128xf32>
      %91 = arith.mulf %75, %83 : vector<8x128xf32>
      %92 = arith.addf %90, %91 : vector<8x128xf32>
      %93 = math.tanh %92 : vector<8x128xf32>
      %94 = arith.mulf %89, %93 : vector<8x128xf32>
      %c0_50 = arith.constant 0 : index
      %c0_51 = arith.constant 0 : index
      %95 = vector.load %arg9[%c0_50, %c0_51] : memref<8x128xf32, #tpu.memory_space<vmem>>, vector<8x128xf32>
      tpu.vector_store %arg9[%c0_50, %c0_51], %69 {strides = array<i32>} : memref<8x128xf32, #tpu.memory_space<vmem>>, vector<8x128xf32>,
      %c0_52 = arith.constant 0 : index
      %c0_53 = arith.constant 0 : index
      %96 = vector.load %arg10[%c0_52, %c0_53] : memref<8x128xf32, #tpu.memory_space<vmem>>, vector<8x128xf32>
      tpu.vector_store %arg10[%c0_52, %c0_53], %67 {strides = array<i32>} : memref<8x128xf32, #tpu.memory_space<vmem>>, vector<8x128xf32>,
      %97 = arith.truncf %69 : vector<8x128xf32> to vector<8x128xbf16>
      %98 = arith.index_cast %arg15 : i32 to index
      %c0_54 = arith.constant 0 : index
      %c0_55 = arith.constant 0 : index
      %99 = vector.load %arg7[%98, %c0_54, %c0_55] : memref<4x8x128xbf16, #tpu.memory_space<vmem>>, vector<1x8x128xbf16>
      %100 = vector.shape_cast %99 : vector<1x8x128xbf16> to vector<8x128xbf16>
      %101 = vector.shape_cast %97 : vector<8x128xbf16> to vector<1x8x128xbf16>
      tpu.vector_store %arg7[%98, %c0_54, %c0_55], %101 {strides = array<i32>} : memref<4x8x128xbf16, #tpu.memory_space<vmem>>, vector<1x8x128xbf16>,
      %102 = arith.index_cast %28 : i32 to index
      %c0_56 = arith.constant 0 : index
      %c0_57 = arith.constant 0 : index
      %103 = vector.load %arg3[%102, %c0_56, %c0_57] : memref<4x8x1xf32, #tpu.memory_space<vmem>>, vector<1x8x1xf32>
      %104 = vector.shape_cast %103 : vector<1x8x1xf32> to vector<8x1xf32>
      %105 = arith.subf %94, %31 : vector<8x128xf32>
      %106 = vector.broadcast %104 : vector<8x1xf32> to vector<8x128xf32>
      %107 = arith.mulf %106, %105 : vector<8x128xf32>
      %108 = arith.addf %31, %107 : vector<8x128xf32>
      %109 = arith.subf %92, %32 : vector<8x128xf32>
      %110 = vector.broadcast %104 : vector<8x1xf32> to vector<8x128xf32>
      %111 = arith.mulf %110, %109 : vector<8x128xf32>
      %112 = arith.addf %32, %111 : vector<8x128xf32>
      %c0_58 = arith.constant 0 : index
      %c0_59 = arith.constant 0 : index
      %113 = vector.load %arg11[%c0_58, %c0_59] : memref<8x128xf32, #tpu.memory_space<vmem>>, vector<8x128xf32>
      tpu.vector_store %arg11[%c0_58, %c0_59], %108 {strides = array<i32>} : memref<8x128xf32, #tpu.memory_space<vmem>>, vector<8x128xf32>,
      %c0_60 = arith.constant 0 : index
      %c0_61 = arith.constant 0 : index
      %114 = vector.load %arg12[%c0_60, %c0_61] : memref<8x128xf32, #tpu.memory_space<vmem>>, vector<8x128xf32>
      tpu.vector_store %arg12[%c0_60, %c0_61], %112 {strides = array<i32>} : memref<8x128xf32, #tpu.memory_space<vmem>>, vector<8x128xf32>,
      %115 = arith.truncf %108 : vector<8x128xf32> to vector<8x128xbf16>
      %116 = arith.index_cast %28 : i32 to index
      %c0_62 = arith.constant 0 : index
      %c0_63 = arith.constant 0 : index
      %117 = vector.load %arg8[%116, %c0_62, %c0_63] : memref<4x8x128xbf16, #tpu.memory_space<vmem>>, vector<1x8x128xbf16>
      %118 = vector.shape_cast %117 : vector<1x8x128xbf16> to vector<8x128xbf16>
      %119 = vector.shape_cast %115 : vector<8x128xbf16> to vector<1x8x128xbf16>
      tpu.vector_store %arg8[%116, %c0_62, %c0_63], %119 {strides = array<i32>} : memref<4x8x128xbf16, #tpu.memory_space<vmem>>, vector<1x8x128xbf16>,
    }
    %c4_i32_29 = arith.constant 4 : i32
    return
  }
  func.func @transform_0(%arg0: i32) -> (i32, i32) {
    %c0_i32 = arith.constant 0 : i32
    %c0_i32_0 = arith.constant 0 : i32
    return %arg0, %c0_i32 : i32, i32
  }
  func.func @transform_1(%arg0: i32) -> (i32, i32) {
    %c2_i32 = arith.constant 2 : i32
    %0 = arith.subi %c2_i32, %arg0 : i32
    %c0_i32 = arith.constant 0 : i32
    %c0_i32_0 = arith.constant 0 : i32
    return %0, %c0_i32 : i32, i32
  }
  func.func @transform_2(%arg0: i32) -> (i32, i32, i32) {
    %c2_i32 = arith.constant 2 : i32
    %0 = arith.subi %c2_i32, %arg0 : i32
    %c0_i32 = arith.constant 0 : i32
    %c0_i32_0 = arith.constant 0 : i32
    %c0_i32_1 = arith.constant 0 : i32
    return %0, %c0_i32, %c0_i32_0 : i32, i32, i32
  }
  func.func @transform_3(%arg0: i32) -> (i32, i32, i32) {
    %c0_i32 = arith.constant 0 : i32
    %c0_i32_0 = arith.constant 0 : i32
    %c0_i32_1 = arith.constant 0 : i32
    %c0_i32_2 = arith.constant 0 : i32
    return %c0_i32, %c0_i32_0, %c0_i32_1 : i32, i32, i32
  }
  func.func @transform_4(%arg0: i32) -> (i32, i32, i32) {
    %c0_i32 = arith.constant 0 : i32
    %c0_i32_0 = arith.constant 0 : i32
    %c0_i32_1 = arith.constant 0 : i32
    %c0_i32_2 = arith.constant 0 : i32
    return %c0_i32, %c0_i32_0, %c0_i32_1 : i32, i32, i32
  }
  func.func @transform_5(%arg0: i32) -> (i32, i32, i32) {
    %c0_i32 = arith.constant 0 : i32
    %c0_i32_0 = arith.constant 0 : i32
    %c0_i32_1 = arith.constant 0 : i32
    %c0_i32_2 = arith.constant 0 : i32
    return %c0_i32, %c0_i32_0, %c0_i32_1 : i32, i32, i32
  }
  func.func @transform_6(%arg0: i32) -> (i32, i32, i32) {
    %c0_i32 = arith.constant 0 : i32
    %c0_i32_0 = arith.constant 0 : i32
    %c0_i32_1 = arith.constant 0 : i32
    return %arg0, %c0_i32, %c0_i32_0 : i32, i32, i32
  }
  func.func @transform_7(%arg0: i32) -> (i32, i32, i32) {
    %c2_i32 = arith.constant 2 : i32
    %0 = arith.subi %c2_i32, %arg0 : i32
    %c0_i32 = arith.constant 0 : i32
    %c0_i32_0 = arith.constant 0 : i32
    %c0_i32_1 = arith.constant 0 : i32
    return %0, %c0_i32, %c0_i32_0 : i32, i32, i32
  }
}

</mosaic_0001>

<bundles_post_ra>
// kernel: tpu_custom_call.1
= control target key start
LH: loop header
LB: loop body
LE: loop exit
PB: predicated region body
PF: predicated region fallthrough
CT: control target
= control target key end

     0   :  { %s3121_s0 = inlined_call_operand.vmem [shape: bf16[96,24], index: 0, kind: input, shape index: {}]   ;;  %s3122_s1 = inlined_call_operand.vmem [shape: bf16[96,24], index: 1, kind: input, shape index: {}]   ;;  %s3123_s2 = inlined_call_operand.vmem [shape: f32[12,8,1], index: 2, kind: input, shape index: {}]   ;;  %s3124_s3 = inlined_call_operand.vmem [shape: bf16[2,24,512], index: 3, kind: input, shape index: {}]   ;;  %s3125_s4 = inlined_call_operand.hbm [shape: bf16[2,128,512], index: 4, kind: input, shape index: {}]   ;;  %s3126_s5 = inlined_call_operand.vmem [shape: f32[2,1,512], index: 5, kind: input, shape index: {}]   ;;  %s3127_s6 = inlined_call_operand.hbm [shape: bf16[12,8,128], index: 6, kind: output, shape index: {0}]   ;;  %s3128_s7 = inlined_call_operand.hbm [shape: bf16[12,8,128], index: 7, kind: output, shape index: {1}]  }
   0x1   :  { %3140 = sst [smem:[#allocation120_spill]] %s3125_s4 }
   0x2   :  { %13 = vsyncpa [#allocation9], 0 }
   0x3   :  { %14 = vsyncpa [#allocation10], 0 }
   0x4   :  { %16 = vsyncpa [#allocation10 + $0x1], 0 }
   0x5   :  { %17 = vsyncpa [#allocation13], 0 }
   0x6   :  { %19 = vsyncpa [#allocation13 + $0x1], 0  ;;  %s2362_s24 = smov 0   ;;  %s2364_s25 = smov 0  }
   0x7   :  { %s2366_s26 = smov 0   ;;  %s2368_s27 = smov 0  }
   0x8   :  { %s2370_s28 = smov 0   ;;  %s2372_s29 = smov 0  }
   0x9   :  { %s2374_s30 = smov 0  }
   0xa LB: > { %3141 = sst [smem:[#allocation17_spill]] %s2285_s24  ;;  %s2398_s8 = sadd.s32 4294967295, %s2309_s30   ;;  %s2309_s30 = sphi %s2374_s30, %s3357_s30   ;;  %s2305_s29 = sphi %s2372_s29, %s3361_s29   ;;  %s2301_s28 = sphi %s2370_s28, %s3365_s28   ;;  %s2297_s27 = sphi %s2368_s27, %s3364_s27   ;;  %s2293_s26 = sphi %s2366_s26, %s3359_s26   ;;  %s2289_s25 = sphi %s2364_s25, %s3363_s25   ;;  %s2285_s24 = sphi %s2362_s24, %s3362_s24  }
   0xb   : > { %3142 = sst [smem:[#allocation18_spill]] %s2293_s26  ;;  %s1584_s9 = sadd.s32 4294967294, %s2309_s30  }
   0xc   : > { %3143 = sst [smem:[#allocation19_spill]] %s2297_s27  ;;  %s2402_s10 = sadd.s32 1, %s2309_s30  }
   0xd   : > { %3144 = sst [smem:[#allocation20_spill]] %s2305_s29  ;;  %s177_s11 = sadd.s32 1, %s2305_s29 }
   0xe   : > { %3145 = sst [smem:[#allocation21_spill]] %s2402_s10  ;;  %s174_s12 = ssub.s32 %s2309_s30, %s2402_s10 }
   0xf   : > { %p187_p0 = scmp.ne.s32.totalorder %s2305_s29, %s2301_s28  ;;  %p175_p1 = scmp.eq.s32.totalorder %s174_s12, 0 }
  0x10   : > { %p188_p2 = scmp.eq.s32.totalorder %s2398_s8, 2  ;;  %p193_p3 = scmp.ne.s32.totalorder %s2301_s28, %s2297_s27 }
  0x11   : > { %p2412_p4 = scmp.eq.s32.totalorder %s1584_s9, 2  ;;  %s200_s17 = ssub.s32 2, %s2309_s30 }
  0x12   : > { %s2417_s14 = scalar_select %p175_p1, %s2305_s29, %s177_s11  }
  0x13   : > { %p2421_p5 = por %p188_p2, %p187_p0  ;;  %p2427_p6 = por %p2412_p4, %p193_p3 }
  0x14   : > { %3147 = sst [smem:[#allocation22_spill]] %s2417_s14  ;;  %s201_s18 = ssub.s32 2, %s2402_s10 }
  0x15   : > { %s3149_s16 = scalar_select %p2427_p6, 1, 0 }
  0x16   : > { %s202_s19 = ssub.s32 %s200_s17, %s201_s18  ;;  %s205_s20 = sadd.s32 1, %s2293_s26 }
  0x17   : > { %3150 = sst [smem:[#allocation23_spill]] %s3149_s16  ;;  %p203_p7 = scmp.eq.s32.totalorder %s202_s19, 0 }
  0x18   : > { %p215_p8 = scmp.ne.s32.totalorder %s2293_s26, %s2289_s25  ;;  %p221_p9 = scmp.ne.s32.totalorder %s2289_s25, %s2285_s24 }
  0x19   : > { %p1585_p10 = scmp.ge.s32.totalorder %s2309_s30, 1  ;;  %p229_p13 = scmp.lt.s32.totalorder %s2309_s30, 4 }
  0x1a   : > { %s2440_s21 = scalar_select %p203_p7, %s2293_s26, %s205_s20  }
  0x1b   : > { %p2444_p11 = por %p215_p8, %p188_p2  ;;  %p2450_p12 = por %p221_p9, %p2412_p4 }
  0x1c   : > { %3151 = sst [smem:[#allocation24_spill]] %s2440_s21  ;;  %p1586_p0 = scmp.ne.s32.totalorder %s2398_s8, 0 }
  0x1d   : > { %s3153_s23 = scalar_select %p2450_p12, 1, 0 }
  0x1e   : > { %s3155_s4 = sld [smem:[#allocation120_spill]]  ;;  %p230_p1 = pnand %p1585_p10, %p229_p13 }
  0x1f   : > { %3154 = sst [smem:[#allocation25_spill]] %s3153_s23  ;;  %p2046_p3 = scmp.eq.s32.totalorder %s2398_s8, 0 }
  0x20   : > { %p2035_p7 = pneg %p230_p1  ;;  %s2315_s17 = smov [#allocation8]  }
  0x21   : > { %s245_s18 = sshll.u32 %s2315_s17, 4  ;;  %s2316_s19 = smov 256   ;;  %s246_s18 = int_to_ptr.vmem [resolvable:$true] %s245_s18 }
  0x22   : > { %p2036_p2 = pnand %p2046_p3, %p2035_p7  ;;  %s2317_s13 = smov 16  }
  0x23   : > { %295 = sbr.rel (%p230_p1) target bundleno = 567 (0x237), region = 44 }
  0x24   : > { %s243_s12 = sshll.u32 %s3155_s4, 4  ;;  %s244_s12 = int_to_ptr.hbm [resolvable:$true] %s243_s12 }
  0x25   : > { %2038 = dma.hbm_to_vmem [thread:$0]  (!%p2036_p2), %s244_s12, 8192, %s246_s18, [#allocation9], %s2316_s19, %s2316_s19, %s2317_s13  }
  0x28   : > { %2272 = dma.done.wait (%p2046_p3), [#allocation9], 8192  }
  0x29   : > { %2274 = vsyncadd (%p2046_p3), [#allocation9], 4294959104  ;;  %s3130_s20 = sand.u32 1, %s2301_s28   ;;  %s3132_s9 = sand.u32 1, %s2289_s25  }
  0x2a   : > { %s2464_s11 = sshll.u32 %s3130_s20, 4  ;;  %s2468_s17 = sshll.u32 %s3132_s9, 4 }
  0x2b   : > { %s1592_s12 = sshll.u32 %s2398_s8, 2  ;;  %s3137_s18 = ssub.s32 2, %s2398_s8 }
  0x2c   : > { %p346_p4 = scmp.lt.s32.totalorder %s1592_s12, 11  ;;  %s1594_s19 = sshll.u32 %s3137_s18, 2 }
  0x2d   : > { %p353_p8 = scmp.lt.s32.totalorder %s1594_s19, 11  ;;  %s337_s16 = scalar_lea.vmem [#allocation11], %s2464_s11 }
  0x2e   : > { %s3367_s12 = smov (!%p346_p4, %s1592_s12), 11  ;;  %s344_s27 = scalar_lea.vmem [#allocation12], %s2468_s17 }
  0x2f   : > { %s3369_s19 = smov (!%p353_p8, %s1594_s19), 11  ;;  %s1593_s13 = sshll.u32 %s3367_s12, 2 }
  0x30   : > { %s2477_s29 = scalar_lea.vmem %s3121_s0, %s1593_s13  ;;  %s1595_s20 = sshll.u32 %s3369_s19, 2 }
  0x31   : > { %s2482_s9 = scalar_lea.vmem %s3122_s1, %s1595_s20  ;;  %s1597_s10 = sshll.u32 %s3369_s19, 3 }
  0x32   : > { %s2487_s18 = scalar_lea.vmem %s3123_s2, %s1597_s10  ;;  %374 = sbr.rel (%p1586_p0) target bundleno = 60 (0x3c), region = 52 }
  0x37   : > { %v2318_v0 = vmov 0.0  }
  0x38   : > { %375 = vst [vmem:[#allocation2] sm:$0xff] %v2318_v0 }
  0x39   : > { %376 = vst [vmem:[#allocation3] sm:$0xff] %v2318_v0 }
  0x3a   : > { %377 = vst [vmem:[#allocation4] sm:$0xff] %v2318_v0 }
  0x3b   : > { %378 = vst [vmem:[#allocation5] sm:$0xff] %v2318_v0 }
  0x3c PF: > { %v387_v1 = vld [vmem:[%s3124_s3 + $0x20] sm:$0xff]  ;;  %v388_v2 = vld [vmem:[%s3124_s3 + $0x28] sm:$0xff]  ;;  %v1951_v8 = vld [vmem:[%s3124_s3 + $0xc] sm:$0xf0]  ;;  %vm446_vm0 = vcmask 1043456   ;;  %vm439_vm1 = vcmask 195584  }
  0x3d   : > { %v1609_v3 = vld [vmem:[%s3124_s3] sm:$0xf]  ;;  %v423_v4 = vunpack.c.l.b16 %v387_v1  ;;  %v424_v5 = vunpack.c.h.b16 %v387_v1  ;;  %v425_v6 = vunpack.c.l.b16 %v388_v2  ;;  %v426_v7 = vunpack.c.h.b16 %v388_v2  ;;  %v1949_v9 = vld [vmem:[%s3124_s3 + $0x4] sm:$0xf]  ;;  %v1611_v10 = vld [vmem:[%s3124_s3 + $0x10] sm:$0xf0] }
  0x3e   : > { %v1617_v15 = vld [vmem:[%s3124_s3 + $0x8] sm:$0xf]  ;;  %v1952_v16 = vld [vmem:[%s3124_s3 + $0x14] sm:$0xf0]  ;;  %v1610_v18 = vor.u32 %v1951_v8, %v1609_v3  ;;  %v1614_v19 = vor.u32 %v1949_v9, %v1611_v10  ;;  %v1950_v20 = vld [vmem:[%s3124_s3 + $0xc] sm:$0xf] }
  0x3f   : > { %v431_v11 = vpack.c.b16 %v423_v4, %v423_v4  ;;  %v432_v12 = vpack.c.b16 %v424_v5, %v424_v5  ;;  %v433_v13 = vpack.c.b16 %v425_v6, %v425_v6  ;;  %v434_v14 = vpack.c.b16 %v426_v7, %v426_v7  ;;  %v1636_v17 = vld [vmem:[%s3124_s3 + $0x58] sm:$0xff]  ;;  %v1635_v24 = vld [vmem:[%s3124_s3 + $0x50] sm:$0xff]  ;;  %v1947_v35 = vld [vmem:[%s2477_s29] sm:$0xff]  ;;  %s2867_s19 = smov 0  }
  0x40   : > { %v1619_v21 = vld [vmem:[%s3124_s3 + $0x18] sm:$0xf0]  ;;  %v599_v22 = vunpack.c.l.b16 %v1636_v17  ;;  %v600_v23 = vunpack.c.h.b16 %v1636_v17  ;;  %v597_v31 = vunpack.c.l.b16 %v1635_v24  ;;  %v598_v32 = vunpack.c.h.b16 %v1635_v24  ;;  %v1656_v38 = vld [vmem:[%s3124_s3 + $0x38] sm:$0xf]  ;;  %v1958_v39 = vld [vmem:[%s3124_s3 + $0x44] sm:$0xf0] }
  0x41   : > { %v448_v25 = vsel %vm446_vm0, %v431_v11, 0  ;;  %v451_v26 = vsel %vm446_vm0, %v432_v12, 0  ;;  %v454_v27 = vsel %vm446_vm0, %v433_v13, 0  ;;  %v457_v28 = vsel %vm446_vm0, %v434_v14, 0  ;;  %v1956_v42 = vld [vmem:[%s3124_s3 + $0x3c] sm:$0xf] }
  0x42   : > { %465 = vmatpush.bf16.msra.mxu0 %v448_v25  ;;  %484 = vmatpush.bf16.msra.mxu1 %v451_v26  ;;  %v607_v29 = vpack.c.b16 %v599_v22, %v599_v22  ;;  %v608_v30 = vpack.c.b16 %v600_v23, %v600_v23  ;;  %v1618_v33 = vor.u32 %v1952_v16, %v1617_v15  ;;  %v1658_v43 = vld [vmem:[%s3124_s3 + $0x48] sm:$0xf0]  ;;  %v1648_v44 = vld [vmem:[%s3124_s3 + $0x30] sm:$0xf]  ;;  %v1957_v45 = vld [vmem:[%s3124_s3 + $0x3c] sm:$0xf0] }
  0x43   : > { %503 = vmatpush.bf16.msra.mxu2 %v454_v27  ;;  %522 = vmatpush.bf16.msra.mxu3 %v457_v28  ;;  %v1622_v34 = vor.u32 %v1950_v20, %v1619_v21  ;;  %v605_v36 = vpack.c.b16 %v597_v31, %v597_v31  ;;  %v606_v37 = vpack.c.b16 %v598_v32, %v598_v32  ;;  %v1955_v50 = vld [vmem:[%s3124_s3 + $0x34] sm:$0xf]  ;;  %v1650_v51 = vld [vmem:[%s3124_s3 + $0x40] sm:$0xf0]  ;;  %v1948_v54 = vld [vmem:[%s2477_s29 + $0x8] sm:$0xff] }
  0x44   : > { %v626_v40 = vsel %vm446_vm0, %v607_v29, 0  ;;  %v629_v41 = vsel %vm446_vm0, %v608_v30, 0  ;;  %v1657_v48 = vor.u32 %v1958_v39, %v1656_v38  ;;  %v1661_v49 = vor.u32 %v1956_v42, %v1658_v43  ;;  %v1953_v55 = vld [vmem:[%s2482_s9] sm:$0xff]  ;;  %v1954_v56 = vld [vmem:[%s2482_s9 + $0x8] sm:$0xff]  ;;  %v2605_v43 = vld [vmem:[#allocation8 + $0x10] sm:$0xf0] }
  0x45   : > { %v620_v46 = vsel %vm446_vm0, %v605_v36, 0  ;;  %v623_v47 = vsel %vm446_vm0, %v606_v37, 0  ;;  %v1649_v52 = vor.u32 %v1957_v45, %v1648_v44  ;;  %v1653_v53 = vor.u32 %v1955_v50, %v1650_v51  ;;  %v389_v57 = vld [vmem:[%s3126_s5] sm:$0xf]  ;;  %v1637_v26 = vld [vmem:[%s3126_s5 + $0x4] sm:$0xf] }
  0x46   : > { %466 = vmatpush.bf16.msra.mxu0 %v1610_v18  ;;  %485 = vmatpush.bf16.msra.mxu1 %v1614_v19  ;;  %v391_v58 = vperm.slane %v389_v57, 0  ;;  %v392_v59 = vperm.slane %v389_v57, 1  ;;  %v393_v0 = vperm.slane %v389_v57, 2  ;;  %v394_v1 = vperm.slane %v389_v57, 3  ;;  %v2595_v38 = vld [vmem:[#allocation8 + $0x4] sm:$0xf] }
  0x47   : > { %504 = vmatpush.bf16.msra.mxu2 %v1618_v33  ;;  %523 = vmatpush.bf16.msra.mxu3 %v1622_v34  ;;  %v2587_v27 = vperm.slane %v1637_v26, 0  ;;  %v2589_v28 = vperm.slane %v1637_v26, 1  ;;  %v2593_v37 = vperm.slane %v1637_v26, 2  ;;  %3156 = vst [vmem:[#allocation26_spill] sm:$0xff] %v2595_v38  ;;  %v2597_v39 = vld [vmem:[#allocation8] sm:$0xf] }
  0x48   : > { %3157 = vst [vmem:[#allocation27_spill] sm:$0xff] %v2597_v39  ;;  %v2603_v42 = vld [vmem:[#allocation8 + $0x8] sm:$0xf]  ;;  %v2607_v44 = vld [vmem:[#allocation8 + $0xc] sm:$0xf0] }
  0x49   : > { %1623 = vmatmul.msk.bf16.vlgmr.msra.gmra.mxu0 %vm439_vm1, %v1947_v35  ;;  %1625 = vmatmul.msk.bf16.vlgmr.msra.gmra.mxu1 %vm439_vm1, %v1947_v35  ;;  %3159 = vst [vmem:[#allocation29_spill] sm:$0xff] %v2603_v42  ;;  %v2609_v45 = vld [vmem:[#allocation8 + $0x18] sm:$0xf0]  ;;  %v2615_v50 = vld [vmem:[#allocation8 + $0x20] sm:$0xf] }
  0x4a   : > { %1627 = vmatmul.msk.bf16.vlgmr.msra.gmra.mxu2 %vm439_vm1, %v1947_v35  ;;  %1629 = vmatmul.msk.bf16.vlgmr.msra.gmra.mxu3 %vm439_vm1, %v1947_v35  ;;  %3160 = vst [vmem:[#allocation30_spill] sm:$0xff] %v2605_v43  ;;  %v2617_v51 = vld [vmem:[#allocation8 + $0x2c] sm:$0xf]  ;;  %v2623_v57 = vld [vmem:[#allocation8 + $0x30] sm:$0xf0] }
  0x4b   : > { %675 = vmatpush.bf16.msrb.mxu2 %v626_v40  ;;  %694 = vmatpush.bf16.msrb.mxu3 %v629_v41  ;;  %v2599_v40 = vperm.slane %v1637_v26, 3  ;;  %v2601_v41 = vld [vmem:[#allocation8 + $0xc] sm:$0xf]  ;;  %3161 = vst [vmem:[#allocation31_spill] sm:$0xff] %v2607_v44  ;;  %v2675_v26 = vld [vmem:[#allocation8 + $0x88] sm:$0xf] }
  0x4c   : > { %637 = vmatpush.bf16.msrb.mxu0 %v620_v46  ;;  %656 = vmatpush.bf16.msrb.mxu1 %v623_v47  ;;  %3158 = vst [vmem:[#allocation28_spill] sm:$0xff] %v2601_v41  ;;  %v2611_v46 = vld [vmem:[#allocation8 + $0x14] sm:$0xf0]  ;;  %v2613_v47 = vld [vmem:[#allocation8 + $0x24] sm:$0xf] }
  0x4d   : > { %3162 = vst [vmem:[#allocation32_spill] sm:$0xff] %v2609_v45  ;;  %v2719_v45 = vld [vmem:[#allocation8 + $0xd4] sm:$0xf0]  ;;  %v2721_v38 = vld [vmem:[#allocation8 + $0xe4] sm:$0xf] }
  0x4e   : > { %3163 = vst [vmem:[#allocation33_spill] sm:$0xff] %v2611_v46  ;;  %v2715_v46 = vld [vmem:[#allocation8 + $0xd8] sm:$0xf0]  ;;  %v2723_v43 = vld [vmem:[#allocation8 + $0xe0] sm:$0xf] }
  0x4f   : > { %676 = vmatpush.bf16.msrb.mxu2 %v1657_v48  ;;  %695 = vmatpush.bf16.msrb.mxu3 %v1661_v49  ;;  %3164 = vst [vmem:[#allocation34_spill] sm:$0xff] %v2613_v47  ;;  %v2729_v44 = vld [vmem:[#allocation8 + $0xf0] sm:$0xf0]  ;;  %v2731_v39 = vld [vmem:[#allocation8 + $0xec] sm:$0xf0] }
  0x50   : > { %638 = vmatpush.bf16.msrb.mxu0 %v1649_v52  ;;  %657 = vmatpush.bf16.msrb.mxu1 %v1653_v53  ;;  %3165 = vst [vmem:[#allocation35_spill] sm:$0xff] %v2617_v51  ;;  %v2619_v52 = vld [vmem:[#allocation8 + $0x28] sm:$0xf]  ;;  %v2751_v47 = vld [vmem:[#allocation8 + $0x114] sm:$0xf0] }
  0x51   : > { %3166 = vst [vmem:[#allocation36_spill] sm:$0xff] %v2619_v52  ;;  %v2745_v52 = vld [vmem:[#allocation8 + $0x110] sm:$0xf0] }
  0x52   : > { %3167 = vst [vmem:[#allocation37_spill] sm:$0xff] %v2623_v57  ;;  %v2755_v57 = vld [vmem:[#allocation8 + $0x124] sm:$0xf] }
  0x53   : > { %3191 = vst [vmem:[#allocation61_spill] sm:$0xff] %v2721_v38 }
  0x54   : > { %3192 = vst [vmem:[#allocation62_spill] sm:$0xff] %v2731_v39 }
  0x55   : > { %3197 = vst [vmem:[#allocation67_spill] sm:$0xff] %v2745_v52  ;;  %v2763_v52 = vld [vmem:[#allocation8 + $0x130] sm:$0xf0] }
  0x56   : > { %3200 = vst [vmem:[#allocation70_spill] sm:$0xff] %v2751_v47  ;;  %v2769_v47 = vld [vmem:[#allocation8 + $0x134] sm:$0xf0] }
  0x57   : > { %3201 = vst [vmem:[#allocation71_spill] sm:$0xff] %v2755_v57  ;;  %v2793_v57 = vld [vmem:[#allocation8 + $0x168] sm:$0xf] }
  0x58   : > { %3205 = vst [vmem:[#allocation75_spill] sm:$0xff] %v2763_v52  ;;  %v2795_v52 = vld [vmem:[#allocation8 + $0x170] sm:$0xf0] }
  0x59   : > { %1624 = vmatmul.msk.bf16.gmra.mxu0 %vm439_vm1, %v1948_v54  ;;  %1626 = vmatmul.msk.bf16.gmra.mxu1 %vm439_vm1, %v1948_v54  ;;  %3208 = vst [vmem:[#allocation78_spill] sm:$0xff] %v2769_v47  ;;  %v2789_v47 = vld [vmem:[#allocation8 + $0x160] sm:$0xf] }
  0x5a   : > { %1628 = vmatmul.msk.bf16.gmra.mxu2 %vm439_vm1, %v1948_v54  ;;  %1630 = vmatmul.msk.bf16.gmra.mxu3 %vm439_vm1, %v1948_v54  ;;  %3218 = vst [vmem:[#allocation88_spill] sm:$0xff] %v2789_v47  ;;  %v2833_v47 = vld [vmem:[#allocation8 + $0x1b4] sm:$0xf0] }
  0x5b   : > { %3220 = vst [vmem:[#allocation90_spill] sm:$0xff] %v2793_v57  ;;  %v2815_v57 = vld [vmem:[#allocation8 + $0x198] sm:$0xf0] }
  0x5c   : > { %3221 = vst [vmem:[#allocation91_spill] sm:$0xff] %v2795_v52  ;;  %v2827_v52 = vld [vmem:[#allocation8 + $0x1b0] sm:$0xf0] }
  0x5d   : > { %3231 = vst [vmem:[#allocation101_spill] sm:$0xff] %v2815_v57  ;;  %v2837_v57 = vld [vmem:[#allocation8 + $0x1c0] sm:$0xf] }
  0x5e   : > { %3237 = vst [vmem:[#allocation107_spill] sm:$0xff] %v2827_v52  ;;  %v2859_v52 = vld [vmem:[#allocation8 + $0x1f0] sm:$0xf0] }
  0x5f   : > { %3240 = vst [vmem:[#allocation110_spill] sm:$0xff] %v2833_v47  ;;  %v2855_v47 = vld [vmem:[#allocation8 + $0x1ec] sm:$0xf] }
  0x69   : > { %1662 = vmatmul.msk.bf16.vlgmr.msrb.gmra.mxu0 %vm439_vm1, %v1953_v55  ;;  %1664 = vmatmul.msk.bf16.vlgmr.msrb.gmra.mxu1 %vm439_vm1, %v1953_v55 }
  0x6a   : > { %1666 = vmatmul.msk.bf16.vlgmr.msrb.gmra.mxu2 %vm439_vm1, %v1953_v55  ;;  %1668 = vmatmul.msk.bf16.vlgmr.msrb.gmra.mxu3 %vm439_vm1, %v1953_v55 }
  0x79   : > { %1663 = vmatmul.msk.bf16.gmra.mxu0 %vm439_vm1, %v1954_v56  ;;  %1665 = vmatmul.msk.bf16.gmra.mxu1 %vm439_vm1, %v1954_v56 }
  0x7a   : > { %1667 = vmatmul.msk.bf16.gmra.mxu2 %vm439_vm1, %v1954_v56  ;;  %1669 = vmatmul.msk.bf16.gmra.mxu3 %vm439_vm1, %v1954_v56 }
  0xc6   : > { %v468_v60 = vpop.f32.mrf.mxu0  ;;  %v487_v61 = vpop.f32.mrf.mxu1 }
  0xc7   : > { %v469_v62 = vadd.f32 %v468_v60, %v391_v58  ;;  %v488_v63 = vadd.f32 %v487_v61, %v392_v59 }
  0xc9   : > { %535 = vst [vmem:[#allocation6] sm:$0xff] %v469_v62  ;;  %v2631_v62 = vld [vmem:[#allocation8 + $0x34] sm:$0xf0] }
  0xca   : > { %536 = vst [vmem:[#allocation6 + $0x8] sm:$0xff] %v488_v63  ;;  %v2633_v63 = vld [vmem:[#allocation8 + $0x44] sm:$0xf] }
  0xcb   : > { %3170 = vst [vmem:[#allocation40_spill] sm:$0xff] %v2631_v62  ;;  %v2743_v62 = vld [vmem:[#allocation8 + $0x108] sm:$0xf] }
  0xcc   : > { %3196 = vst [vmem:[#allocation66_spill] sm:$0xff] %v2743_v62  ;;  %v2761_v62 = vld [vmem:[#allocation8 + $0x128] sm:$0xf] }
  0xcd   : > { %v506_v2 = vpop.f32.mrf.mxu2  ;;  %v525_v3 = vpop.f32.mrf.mxu3  ;;  %3204 = vst [vmem:[#allocation74_spill] sm:$0xff] %v2761_v62  ;;  %v2781_v62 = vld [vmem:[#allocation8 + $0x14c] sm:$0xf0] }
  0xce   : > { %v507_v4 = vadd.f32 %v506_v2, %v393_v0  ;;  %v526_v5 = vadd.f32 %v525_v3, %v394_v1  ;;  %v470_v6 = vpop.f32.mrf.mxu0  ;;  %v489_v7 = vpop.f32.mrf.mxu1  ;;  %v2639_v2 = vld [vmem:[#allocation8 + $0x48] sm:$0xf]  ;;  %v2641_v3 = vld [vmem:[#allocation8 + $0x50] sm:$0xf0]  ;;  %3214 = vst [vmem:[#allocation84_spill] sm:$0xff] %v2781_v62 }
  0xcf   : > { %v471_v8 = vadd.f32 %v470_v6, %v391_v58  ;;  %v490_v9 = vadd.f32 %v489_v7, %v392_v59  ;;  %3173 = vst [vmem:[#allocation43_spill] sm:$0xff] %v2639_v2  ;;  %v2647_v6 = vld [vmem:[#allocation8 + $0x54] sm:$0xf0]  ;;  %v2649_v7 = vld [vmem:[#allocation8 + $0x64] sm:$0xf] }
  0xd0   : > { %537 = vst [vmem:[#allocation6 + $0x10] sm:$0xff] %v507_v4  ;;  %v2643_v4 = vld [vmem:[#allocation8 + $0x4c] sm:$0xf0] }
  0xd1   : > { %538 = vst [vmem:[#allocation6 + $0x18] sm:$0xff] %v526_v5  ;;  %v2645_v5 = vld [vmem:[#allocation8 + $0x58] sm:$0xf0]  ;;  %v2813_v62 = vld [vmem:[#allocation8 + $0x18c] sm:$0xf0] }
  0xd2   : > { %539 = vst [vmem:[#allocation6 + $0x20] sm:$0xff] %v471_v8  ;;  %v2651_v8 = vld [vmem:[#allocation8 + $0x60] sm:$0xf] }
  0xd3   : > { %540 = vst [vmem:[#allocation6 + $0x28] sm:$0xff] %v490_v9  ;;  %v2653_v9 = vld [vmem:[#allocation8 + $0x6c] sm:$0xf] }
  0xd4   : > { %3174 = vst [vmem:[#allocation44_spill] sm:$0xff] %v2641_v3 }
  0xd5   : > { %v508_v10 = vpop.f32.mrf.mxu2  ;;  %v527_v11 = vpop.f32.mrf.mxu3  ;;  %3175 = vst [vmem:[#allocation45_spill] sm:$0xff] %v2643_v4 }
  0xd6   : > { %v509_v12 = vadd.f32 %v508_v10, %v393_v0  ;;  %v528_v13 = vadd.f32 %v527_v11, %v394_v1  ;;  %v473_v14 = vpop.f32.mrf.mxu0  ;;  %v492_v15 = vpop.f32.mrf.mxu1  ;;  %3176 = vst [vmem:[#allocation46_spill] sm:$0xff] %v2645_v5  ;;  %v2655_v10 = vld [vmem:[#allocation8 + $0x68] sm:$0xf]  ;;  %v2657_v11 = vld [vmem:[#allocation8 + $0x70] sm:$0xf0] }
  0xd7   : > { %v474_v16 = vadd.f32 %v473_v14, %v391_v58  ;;  %v493_v17 = vadd.f32 %v492_v15, %v392_v59  ;;  %3177 = vst [vmem:[#allocation47_spill] sm:$0xff] %v2647_v6  ;;  %v2659_v14 = vld [vmem:[#allocation8 + $0x6c] sm:$0xf0]  ;;  %v2661_v15 = vld [vmem:[#allocation8 + $0x78] sm:$0xf0] }
  0xd8   : > { %541 = vst [vmem:[#allocation6 + $0x30] sm:$0xff] %v509_v12 }
  0xd9   : > { %542 = vst [vmem:[#allocation6 + $0x38] sm:$0xff] %v528_v13 }
  0xda   : > { %543 = vst [vmem:[#allocation6 + $0x40] sm:$0xff] %v474_v16  ;;  %v2663_v16 = vld [vmem:[#allocation8 + $0x74] sm:$0xf0] }
  0xdb   : > { %544 = vst [vmem:[#allocation6 + $0x48] sm:$0xff] %v493_v17 }
  0xdc   : > { %3178 = vst [vmem:[#allocation48_spill] sm:$0xff] %v2649_v7 }
  0xdd   : > { %v511_v18 = vpop.f32.mrf.mxu2  ;;  %v530_v19 = vpop.f32.mrf.mxu3  ;;  %3179 = vst [vmem:[#allocation49_spill] sm:$0xff] %v2651_v8 }
  0xde   : > { %v512_v20 = vadd.f32 %v511_v18, %v393_v0  ;;  %v531_v21 = vadd.f32 %v530_v19, %v394_v1  ;;  %v475_v22 = vpop.f32.mrf.mxu0  ;;  %v494_v23 = vpop.f32.mrf.mxu1  ;;  %3180 = vst [vmem:[#allocation50_spill] sm:$0xff] %v2653_v9 }
  0xdf   : > { %v476_v24 = vadd.f32 %v475_v22, %v391_v58  ;;  %v495_v25 = vadd.f32 %v494_v23, %v392_v59  ;;  %v2625_v58 = vld [vmem:[#allocation8 + $0x2c] sm:$0xf0]  ;;  %v2627_v59 = vld [vmem:[#allocation8 + $0x38] sm:$0xf0]  ;;  %3181 = vst [vmem:[#allocation51_spill] sm:$0xff] %v2655_v10 }
  0xe0   : > { %545 = vst [vmem:[#allocation6 + $0x50] sm:$0xff] %v512_v20  ;;  %v2669_v22 = vld [vmem:[#allocation8 + $0x80] sm:$0xf]  ;;  %v2671_v23 = vld [vmem:[#allocation8 + $0x8c] sm:$0xf] }
  0xe1   : > { %546 = vst [vmem:[#allocation6 + $0x58] sm:$0xff] %v531_v21  ;;  %v2667_v21 = vld [vmem:[#allocation8 + $0x84] sm:$0xf] }
  0xe2   : > { %547 = vst [vmem:[#allocation6 + $0x60] sm:$0xff] %v476_v24 }
  0xe3   : > { %548 = vst [vmem:[#allocation6 + $0x68] sm:$0xff] %v495_v25 }
  0xe4   : > { %3168 = vst [vmem:[#allocation38_spill] sm:$0xff] %v2625_v58  ;;  %v2765_v58 = vld [vmem:[#allocation8 + $0x12c] sm:$0xf0] }
  0xe5   : > { %v513_v29 = vpop.f32.mrf.mxu2  ;;  %v532_v30 = vpop.f32.mrf.mxu3  ;;  %3169 = vst [vmem:[#allocation39_spill] sm:$0xff] %v2627_v59  ;;  %v2747_v59 = vld [vmem:[#allocation8 + $0x10c] sm:$0xf0] }
  0xe6   : > { %v514_v31 = vadd.f32 %v513_v29, %v393_v0  ;;  %v533_v32 = vadd.f32 %v532_v30, %v394_v1  ;;  %v640_v33 = vpop.f32.mrf.mxu0  ;;  %v659_v34 = vpop.f32.mrf.mxu1  ;;  %v2635_v0 = vld [vmem:[#allocation8 + $0x40] sm:$0xf]  ;;  %v2637_v1 = vld [vmem:[#allocation8 + $0x4c] sm:$0xf]  ;;  %3182 = vst [vmem:[#allocation52_spill] sm:$0xff] %v2657_v11 }
  0xe7   : > { %v641_v35 = vadd.f32 %v640_v33, %v2587_v27  ;;  %v660_v36 = vadd.f32 %v659_v34, %v2589_v28  ;;  %3171 = vst [vmem:[#allocation41_spill] sm:$0xff] %v2635_v0  ;;  %v2677_v29 = vld [vmem:[#allocation8 + $0x90] sm:$0xf0]  ;;  %v2679_v30 = vld [vmem:[#allocation8 + $0x8c] sm:$0xf0] }
  0xe8   : > { %549 = vst [vmem:[#allocation6 + $0x70] sm:$0xff] %v514_v31  ;;  %v2681_v31 = vld [vmem:[#allocation8 + $0x98] sm:$0xf0]  ;;  %v2685_v33 = vld [vmem:[#allocation8 + $0xa4] sm:$0xf] }
  0xe9   : > { %550 = vst [vmem:[#allocation6 + $0x78] sm:$0xff] %v533_v32  ;;  %v2683_v32 = vld [vmem:[#allocation8 + $0x94] sm:$0xf0]  ;;  %v2687_v34 = vld [vmem:[#allocation8 + $0xa0] sm:$0xf] }
  0xea   : > { %707 = vst [vmem:[#allocation7] sm:$0xff] %v641_v35  ;;  %v2689_v35 = vld [vmem:[#allocation8 + $0xac] sm:$0xf] }
  0xeb   : > { %708 = vst [vmem:[#allocation7 + $0x8] sm:$0xff] %v660_v36  ;;  %v2691_v36 = vld [vmem:[#allocation8 + $0xa8] sm:$0xf] }
  0xec   : > { %3172 = vst [vmem:[#allocation42_spill] sm:$0xff] %v2637_v1 }
  0xed   : > { %v678_v48 = vpop.f32.mrf.mxu2  ;;  %v697_v49 = vpop.f32.mrf.mxu3  ;;  %3183 = vst [vmem:[#allocation53_spill] sm:$0xff] %v2659_v14 }
  0xee   : > { %v679_v53 = vadd.f32 %v678_v48, %v2593_v37  ;;  %v698_v54 = vadd.f32 %v697_v49, %v2599_v40  ;;  %v642_v55 = vpop.f32.mrf.mxu0  ;;  %v661_v56 = vpop.f32.mrf.mxu1  ;;  %3184 = vst [vmem:[#allocation54_spill] sm:$0xff] %v2661_v15  ;;  %v2693_v48 = vld [vmem:[#allocation8 + $0xb0] sm:$0xf0]  ;;  %v2695_v49 = vld [vmem:[#allocation8 + $0xac] sm:$0xf0] }
  0xef   : > { %v643_v60 = vadd.f32 %v642_v55, %v2587_v27  ;;  %v662_v61 = vadd.f32 %v661_v56, %v2589_v28  ;;  %3185 = vst [vmem:[#allocation55_spill] sm:$0xff] %v2663_v16  ;;  %v2701_v55 = vld [vmem:[#allocation8 + $0xc4] sm:$0xf] }
  0xf0   : > { %709 = vst [vmem:[#allocation7 + $0x10] sm:$0xff] %v679_v53  ;;  %v2697_v53 = vld [vmem:[#allocation8 + $0xb8] sm:$0xf0] }
  0xf1   : > { %710 = vst [vmem:[#allocation7 + $0x18] sm:$0xff] %v698_v54  ;;  %v2699_v54 = vld [vmem:[#allocation8 + $0xb4] sm:$0xf0] }
  0xf2   : > { %711 = vst [vmem:[#allocation7 + $0x20] sm:$0xff] %v643_v60 }
  0xf3   : > { %712 = vst [vmem:[#allocation7 + $0x28] sm:$0xff] %v662_v61  ;;  %v2703_v61 = vld [vmem:[#allocation8 + $0xc0] sm:$0xf] }
  0xf4   : > { %3186 = vst [vmem:[#allocation56_spill] sm:$0xff] %v2667_v21 }
  0xf5   : > { %v680_v12 = vpop.f32.mrf.mxu2  ;;  %v699_v13 = vpop.f32.mrf.mxu3  ;;  %3187 = vst [vmem:[#allocation57_spill] sm:$0xff] %v2669_v22 }
  0xf6   : > { %v681_v17 = vadd.f32 %v680_v12, %v2593_v37  ;;  %v700_v18 = vadd.f32 %v699_v13, %v2599_v40  ;;  %v645_v19 = vpop.f32.mrf.mxu0  ;;  %v664_v20 = vpop.f32.mrf.mxu1  ;;  %v2705_v12 = vld [vmem:[#allocation8 + $0xcc] sm:$0xf]  ;;  %v2707_v13 = vld [vmem:[#allocation8 + $0xc8] sm:$0xf]  ;;  %3198 = vst [vmem:[#allocation68_spill] sm:$0xff] %v2747_v59 }
  0xf7   : > { %v646_v24 = vadd.f32 %v645_v19, %v2587_v27  ;;  %v665_v25 = vadd.f32 %v664_v20, %v2589_v28  ;;  %3188 = vst [vmem:[#allocation58_spill] sm:$0xff] %v2705_v12  ;;  %v2779_v59 = vld [vmem:[#allocation8 + $0x150] sm:$0xf0] }
  0xf8   : > { %713 = vst [vmem:[#allocation7 + $0x30] sm:$0xff] %v681_v17 }
  0xf9   : > { %714 = vst [vmem:[#allocation7 + $0x38] sm:$0xff] %v700_v18 }
  0xfa   : > { %715 = vst [vmem:[#allocation7 + $0x40] sm:$0xff] %v646_v24  ;;  %v2711_v24 = vld [vmem:[#allocation8 + $0xd0] sm:$0xf0] }
  0xfb   : > { %716 = vst [vmem:[#allocation7 + $0x48] sm:$0xff] %v665_v25  ;;  %v2713_v25 = vld [vmem:[#allocation8 + $0xcc] sm:$0xf0] }
  0xfc   : > { %3189 = vst [vmem:[#allocation59_spill] sm:$0xff] %v2707_v13 }
  0xfd   : > { %v683_v56 = vpop.f32.mrf.mxu2  ;;  %v702_v60 = vpop.f32.mrf.mxu3  ;;  %3190 = vst [vmem:[#allocation60_spill] sm:$0xff] %v2711_v24 }
  0xfe   : > { %v684_v17 = vadd.f32 %v683_v56, %v2593_v37  ;;  %v703_v18 = vadd.f32 %v702_v60, %v2599_v40  ;;  %v647_v19 = vpop.f32.mrf.mxu0  ;;  %v666_v20 = vpop.f32.mrf.mxu1  ;;  %v2725_v56 = vld [vmem:[#allocation8 + $0xec] sm:$0xf]  ;;  %v2727_v60 = vld [vmem:[#allocation8 + $0xe8] sm:$0xf]  ;;  %3206 = vst [vmem:[#allocation76_spill] sm:$0xff] %v2765_v58 }
  0xff   : > { %v648_v42 = vadd.f32 %v647_v19, %v2587_v27  ;;  %v667_v41 = vadd.f32 %v666_v20, %v2589_v28  ;;  %v2733_v27 = vld [vmem:[#allocation8 + $0xf8] sm:$0xf0]  ;;  %v2735_v28 = vld [vmem:[#allocation8 + $0xf4] sm:$0xf0]  ;;  %v2737_v19 = vld [vmem:[#allocation8 + $0x104] sm:$0xf] }
 0x100   : > { %717 = vst [vmem:[#allocation7 + $0x50] sm:$0xff] %v684_v17  ;;  %v2739_v20 = vld [vmem:[#allocation8 + $0x100] sm:$0xf]  ;;  %v2741_v17 = vld [vmem:[#allocation8 + $0x10c] sm:$0xf] }
 0x101   : > { %718 = vst [vmem:[#allocation7 + $0x58] sm:$0xff] %v703_v18  ;;  %v2797_v58 = vld [vmem:[#allocation8 + $0x16c] sm:$0xf0] }
 0x102   : > { %719 = vst [vmem:[#allocation7 + $0x60] sm:$0xff] %v648_v42  ;;  %v2749_v42 = vld [vmem:[#allocation8 + $0x118] sm:$0xf0] }
 0x103   : > { %720 = vst [vmem:[#allocation7 + $0x68] sm:$0xff] %v667_v41 }
 0x104   : > { %3193 = vst [vmem:[#allocation63_spill] sm:$0xff] %v2737_v19 }
 0x105   : > { %3194 = vst [vmem:[#allocation64_spill] sm:$0xff] %v2739_v20  ;;  %v685_v18 = vpop.f32.mrf.mxu2  ;;  %v704_v51 = vpop.f32.mrf.mxu3  ;;  %v2757_v20 = vld [vmem:[#allocation8 + $0x120] sm:$0xf] }
 0x106   : > { %3195 = vst [vmem:[#allocation65_spill] sm:$0xff] %v2741_v17  ;;  %v686_v41 = vadd.f32 %v685_v18, %v2593_v37  ;;  %v705_v19 = vadd.f32 %v704_v51, %v2599_v40  ;;  %v2759_v17 = vld [vmem:[#allocation8 + $0x12c] sm:$0xf]  ;;  %v2771_v37 = vld [vmem:[#allocation8 + $0x144] sm:$0xf] }
 0x107   : > { %3199 = vst [vmem:[#allocation69_spill] sm:$0xff] %v2749_v42  ;;  %v2767_v42 = vld [vmem:[#allocation8 + $0x138] sm:$0xf0]  ;;  %v2773_v40 = vld [vmem:[#allocation8 + $0x140] sm:$0xf] }
 0x108   : > { %3202 = vst [vmem:[#allocation72_spill] sm:$0xff] %v2757_v20  ;;  %v2775_v51 = vld [vmem:[#allocation8 + $0x14c] sm:$0xf]  ;;  %v2777_v18 = vld [vmem:[#allocation8 + $0x148] sm:$0xf] }
 0x109   : > { %3203 = vst [vmem:[#allocation73_spill] sm:$0xff] %v2759_v17  ;;  %v2783_v17 = vld [vmem:[#allocation8 + $0x158] sm:$0xf0]  ;;  %v2801_v20 = vld [vmem:[#allocation8 + $0x174] sm:$0xf0] }
 0x10a   : > { %721 = vst [vmem:[#allocation7 + $0x70] sm:$0xff] %v686_v41  ;;  %v2785_v41 = vld [vmem:[#allocation8 + $0x154] sm:$0xf0] }
 0x10b   : > { %3207 = vst [vmem:[#allocation77_spill] sm:$0xff] %v2767_v42  ;;  %v2787_v42 = vld [vmem:[#allocation8 + $0x164] sm:$0xf] }
 0x10c   : > { %722 = vst [vmem:[#allocation7 + $0x78] sm:$0xff] %v705_v19  ;;  %v2791_v19 = vld [vmem:[#allocation8 + $0x16c] sm:$0xf] }
 0x10d   : > { %3209 = vst [vmem:[#allocation79_spill] sm:$0xff] %v2771_v37  ;;  %v2809_v37 = vld [vmem:[#allocation8 + $0x188] sm:$0xf] }
 0x10e   : > { %3210 = vst [vmem:[#allocation80_spill] sm:$0xff] %v2773_v40  ;;  %v2817_v40 = vld [vmem:[#allocation8 + $0x194] sm:$0xf0] }
 0x10f   : > { %3211 = vst [vmem:[#allocation81_spill] sm:$0xff] %v2775_v51  ;;  %v2803_v51 = vld [vmem:[#allocation8 + $0x184] sm:$0xf] }
 0x110   : > { %3212 = vst [vmem:[#allocation82_spill] sm:$0xff] %v2777_v18  ;;  %v2799_v18 = vld [vmem:[#allocation8 + $0x178] sm:$0xf0] }
 0x111   : > { %3213 = vst [vmem:[#allocation83_spill] sm:$0xff] %v2779_v59  ;;  %v2811_v59 = vld [vmem:[#allocation8 + $0x190] sm:$0xf0] }
 0x112   : > { %3215 = vst [vmem:[#allocation85_spill] sm:$0xff] %v2783_v17  ;;  %v2805_v17 = vld [vmem:[#allocation8 + $0x180] sm:$0xf] }
 0x113   : > { %3216 = vst [vmem:[#allocation86_spill] sm:$0xff] %v2785_v41  ;;  %v2807_v41 = vld [vmem:[#allocation8 + $0x18c] sm:$0xf] }
 0x114   : > { %3217 = vst [vmem:[#allocation87_spill] sm:$0xff] %v2787_v42  ;;  %v2825_v42 = vld [vmem:[#allocation8 + $0x1a8] sm:$0xf] }
 0x115   : > { %3219 = vst [vmem:[#allocation89_spill] sm:$0xff] %v2791_v19  ;;  %v2819_v19 = vld [vmem:[#allocation8 + $0x1a4] sm:$0xf] }
 0x116   : > { %3222 = vst [vmem:[#allocation92_spill] sm:$0xff] %v2797_v58  ;;  %v2829_v58 = vld [vmem:[#allocation8 + $0x1ac] sm:$0xf0] }
 0x117   : > { %3223 = vst [vmem:[#allocation93_spill] sm:$0xff] %v2799_v18  ;;  %v2821_v18 = vld [vmem:[#allocation8 + $0x1a0] sm:$0xf] }
 0x118   : > { %3224 = vst [vmem:[#allocation94_spill] sm:$0xff] %v2801_v20  ;;  %v2823_v20 = vld [vmem:[#allocation8 + $0x1ac] sm:$0xf] }
 0x119   : > { %3225 = vst [vmem:[#allocation95_spill] sm:$0xff] %v2803_v51  ;;  %v2841_v51 = vld [vmem:[#allocation8 + $0x1c8] sm:$0xf] }
 0x11a   : > { %3226 = vst [vmem:[#allocation96_spill] sm:$0xff] %v2805_v17  ;;  %v2849_v17 = vld [vmem:[#allocation8 + $0x1d4] sm:$0xf0] }
 0x11b   : > { %3227 = vst [vmem:[#allocation97_spill] sm:$0xff] %v2807_v41  ;;  %v2835_v41 = vld [vmem:[#allocation8 + $0x1c4] sm:$0xf] }
 0x11c   : > { %3228 = vst [vmem:[#allocation98_spill] sm:$0xff] %v2809_v37  ;;  %v2831_v37 = vld [vmem:[#allocation8 + $0x1b8] sm:$0xf0] }
 0x11d   : > { %3229 = vst [vmem:[#allocation99_spill] sm:$0xff] %v2811_v59  ;;  %v2843_v59 = vld [vmem:[#allocation8 + $0x1d0] sm:$0xf0] }
 0x11e   : > { %3230 = vst [vmem:[#allocation100_spill] sm:$0xff] %v2813_v62  ;;  %v2845_v62 = vld [vmem:[#allocation8 + $0x1cc] sm:$0xf0] }
 0x11f   : > { %3232 = vst [vmem:[#allocation102_spill] sm:$0xff] %v2817_v40  ;;  %v2839_v40 = vld [vmem:[#allocation8 + $0x1cc] sm:$0xf] }
 0x120   : > { %3233 = vst [vmem:[#allocation103_spill] sm:$0xff] %v2819_v19  ;;  %v2857_v19 = vld [vmem:[#allocation8 + $0x1e8] sm:$0xf] }
 0x121   : > { %3234 = vst [vmem:[#allocation104_spill] sm:$0xff] %v2821_v18  ;;  %v2865_v18 = vld [vmem:[#allocation8 + $0x1f4] sm:$0xf0] }
 0x122   : > { %3235 = vst [vmem:[#allocation105_spill] sm:$0xff] %v2823_v20  ;;  %v2851_v20 = vld [vmem:[#allocation8 + $0x1e4] sm:$0xf] }
 0x123   : > { %3236 = vst [vmem:[#allocation106_spill] sm:$0xff] %v2825_v42  ;;  %v2847_v42 = vld [vmem:[#allocation8 + $0x1d8] sm:$0xf0] }
 0x124   : > { %3238 = vst [vmem:[#allocation108_spill] sm:$0xff] %v2829_v58  ;;  %v2861_v58 = vld [vmem:[#allocation8 + $0x1ec] sm:$0xf0] }
 0x125   : > { %3239 = vst [vmem:[#allocation109_spill] sm:$0xff] %v2831_v37  ;;  %v2853_v37 = vld [vmem:[#allocation8 + $0x1e0] sm:$0xf] }
 0x126   : > { %3241 = vst [vmem:[#allocation111_spill] sm:$0xff] %v2835_v41 }
 0x127   : > { %3242 = vst [vmem:[#allocation112_spill] sm:$0xff] %v2839_v40 }
 0x128   : > { %3243 = vst [vmem:[#allocation113_spill] sm:$0xff] %v2841_v51  ;;  %v2863_v51 = vld [vmem:[#allocation8 + $0x1f8] sm:$0xf0] }
 0x129   : > { %3244 = vst [vmem:[#allocation114_spill] sm:$0xff] %v2843_v59 }
 0x12a   : > { %3245 = vst [vmem:[#allocation115_spill] sm:$0xff] %v2847_v42 }
 0x12b   : > { %3246 = vst [vmem:[#allocation116_spill] sm:$0xff] %v2849_v17 }
 0x12c   : > { %3247 = vst [vmem:[#allocation117_spill] sm:$0xff] %v2851_v20 }
 0x12d   : > { %3248 = vst [vmem:[#allocation118_spill] sm:$0xff] %v2857_v19 }
 0x12e   : > { %3249 = vst [vmem:[#allocation119_spill] sm:$0xff] %v2865_v18 }
 0x12f LB: >> { %v3250_v39 = vld [vmem:[#allocation62_spill] sm:$0xff]  ;;  %v3251_v38 = vld [vmem:[#allocation61_spill] sm:$0xff]  ;;  %v1799_v42 = vor.u32 %v2725_v56, %v2733_v27  ;;  %v1795_v41 = vor.u32 %v2735_v28, %v2727_v60  ;;  %v1771_v59 = vor.u32 %v2713_v25, %v2703_v61  ;;  %v3252_v24 = vld [vmem:[#allocation60_spill] sm:$0xff]  ;;  %s2933_s13 = ssub.s32 3, %s2313_s19  ;;  %s2023_s14 = sshll.u32 %s2313_s19, 5  ;;  %s2313_s19 = sphi %s2867_s19, %s793_s19  }
 0x130   : >> { %v1787_v17 = vor.u32 %v3250_v39, %v2723_v43  ;;  %v1791_v40 = vor.u32 %v3251_v38, %v2729_v44  ;;  %v1775_v18 = vor.u32 %v2701_v55, %v3252_v24  ;;  %v3253_v12 = vld [vmem:[#allocation58_spill] sm:$0xff]  ;;  %v3254_v13 = vld [vmem:[#allocation59_spill] sm:$0xff]  ;;  %v1767_v24 = vor.u32 %v2689_v35, %v2697_v53  ;;  %v3255_v22 = vld [vmem:[#allocation57_spill] sm:$0xff]  ;;  %s1937_s4 = sshll.u32 %s2933_s13, 3  ;;  %s801_s21 = scalar_lea.vmem [#allocation6], %s2023_s14 }
 0x131   : >> { %1006 = vmatpush.bf16.msra.mxu3 %v1799_v42  ;;  %v1783_v39 = vor.u32 %v3253_v12, %v2715_v46  ;;  %993 = vmatpush.bf16.msra.mxu2 %v1795_v41  ;;  %v1779_v38 = vor.u32 %v2719_v45, %v3254_v13  ;;  %v1763_v42 = vor.u32 %v2699_v54, %v2691_v36  ;;  %v3256_v21 = vld [vmem:[#allocation56_spill] sm:$0xff]  ;;  %v3257_v8 = vld [vmem:[#allocation49_spill] sm:$0xff]  ;;  %v3261_v15 = vld [vmem:[#allocation54_spill] sm:$0xff]  ;;  %s1380_s26 = scalar_lea.vmem %s2487_s18, %s1937_s4  ;;  %s2024_s24 = sshll.u32 %s2933_s13, 5 }
 0x132   : >> { %967 = vmatpush.bf16.msra.mxu0 %v1787_v17  ;;  %980 = vmatpush.bf16.msra.mxu1 %v1791_v40  ;;  %v1755_v17 = vor.u32 %v2695_v49, %v2687_v34  ;;  %v1759_v40 = vor.u32 %v2685_v33, %v2693_v48  ;;  %v1751_v41 = vor.u32 %v2671_v23, %v2681_v31  ;;  %v3258_v14 = vld [vmem:[#allocation53_spill] sm:$0xff]  ;;  %v3259_v11 = vld [vmem:[#allocation52_spill] sm:$0xff]  ;;  %v3262_v9 = vld [vmem:[#allocation50_spill] sm:$0xff]  ;;  %s3022_s10 = scalar_lea.vmem [#allocation7], %s2024_s24  ;;  %s1936_s23 = sshll.u32 %s2313_s19, 2 }
 0x133   : >> { %v3260_v7 = vld [vmem:[#allocation48_spill] sm:$0xff]  ;;  %v3263_v10 = vld [vmem:[#allocation51_spill] sm:$0xff]  ;;  %v3265_v0 = vld [vmem:[#allocation41_spill] sm:$0xff]  ;;  %s1377_s29 = scalar_lea.vmem %s337_s16, %s1936_s23 [#allocation11]  ;;  %s1938_s20 = sshll.u32 %s2933_s13, 2 }
 0x134   : >> { %v3264_v16 = vld [vmem:[#allocation55_spill] sm:$0xff]  ;;  %v3266_v4 = vld [vmem:[#allocation45_spill] sm:$0xff]  ;;  %v3267_v3 = vld [vmem:[#allocation44_spill] sm:$0xff]  ;;  %s1397_s9 = scalar_lea.vmem %s344_s27, %s1938_s20 [#allocation12]  ;;  %s793_s19 = sadd.s32 1, %s2313_s19  }
 0x135   : >> { %1007 = vmatpush.bf16.msra.mxu3 %v1783_v39  ;;  %994 = vmatpush.bf16.msra.mxu2 %v1779_v38  ;;  %v1747_v39 = vor.u32 %v2683_v32, %v2675_v26  ;;  %v1723_v38 = vor.u32 %v3258_v14, %v3257_v8  ;;  %v3268_v5 = vld [vmem:[#allocation46_spill] sm:$0xff]  ;;  %v3270_v2 = vld [vmem:[#allocation43_spill] sm:$0xff]  ;;  %v3277_v8 = vld [vmem:[#allocation36_spill] sm:$0xff]  ;;  %p790_p9 = scmp.ge.s32.totalorder %s793_s19, 4  }
 0x136   : >> { %968 = vmatpush.bf16.msra.mxu0 %v1771_v59  ;;  %981 = vmatpush.bf16.msra.mxu1 %v1775_v18  ;;  %v1739_v59 = vor.u32 %v2679_v30, %v3255_v22  ;;  %v1743_v18 = vor.u32 %v3256_v21, %v2677_v29  ;;  %v3269_v1 = vld [vmem:[#allocation42_spill] sm:$0xff]  ;;  %v3271_v6 = vld [vmem:[#allocation47_spill] sm:$0xff]  ;;  %v3285_v20 = vld [vmem:[#allocation117_spill] sm:$0xff]  ;;  %s2025_s12 = sshll.u32 (%p790_p9), %s2398_s8, 4  ;;  %s1417_s14 = sshll.u32 (%p790_p9), %s337_s16, 4  ;;  %s1418_s14 = int_to_ptr.vmem [resolvable:$true] %s1417_s14 }
 0x137   : >> { %v3288_v19 = vld [vmem:[#allocation118_spill] sm:$0xff]  ;;  %s3350_s24 = sand.u32 (%p790_p9), 1, %s2301_s28   ;;  %s2203_s20 = scalar_lea.hbm (%p790_p9), %s3127_s6, 48 }
 0x139   : >> { %1008 = vmatpush.bf16.msra.mxu3 %v1767_v24  ;;  %995 = vmatpush.bf16.msra.mxu2 %v1763_v42  ;;  %v1731_v24 = vor.u32 %v3264_v16, %v3263_v10  ;;  %v1707_v42 = vor.u32 %v3266_v4, %v3265_v0  ;;  %v3275_v4 = vld [vmem:[#allocation39_spill] sm:$0xff]  ;;  %v3309_v10 = vld [vmem:[#allocation97_spill] sm:$0xff] }
 0x13a   : >> { %969 = vmatpush.bf16.msra.mxu0 %v1755_v17  ;;  %982 = vmatpush.bf16.msra.mxu1 %v1759_v40  ;;  %v1727_v17 = vor.u32 %v3260_v7, %v3259_v11  ;;  %v1735_v40 = vor.u32 %v3262_v9, %v3261_v15  ;;  %v3274_v7 = vld [vmem:[#allocation34_spill] sm:$0xff] }
 0x13d   : >> { %1009 = vmatpush.bf16.msra.mxu3 %v1751_v41  ;;  %996 = vmatpush.bf16.msra.mxu2 %v1747_v39  ;;  %v1715_v41 = vor.u32 %v3271_v6, %v3270_v2  ;;  %v3272_v39 = vld [vmem:[#allocation38_spill] sm:$0xff]  ;;  %v3280_v2 = vld [vmem:[#allocation31_spill] sm:$0xff] }
 0x13e   : >> { %970 = vmatpush.bf16.msra.mxu0 %v1739_v59  ;;  %983 = vmatpush.bf16.msra.mxu1 %v1743_v18  ;;  %v1711_v59 = vor.u32 %v2633_v63, %v3267_v3  ;;  %v1719_v18 = vor.u32 %v3269_v1, %v3268_v5  ;;  %v3276_v3 = vld [vmem:[#allocation35_spill] sm:$0xff]  ;;  %v3278_v1 = vld [vmem:[#allocation40_spill] sm:$0xff]  ;;  %v3282_v6 = vld [vmem:[#allocation26_spill] sm:$0xff] }
 0x13f   : >> { %v1699_v5 = vor.u32 %v3278_v1, %v3277_v8  ;;  %v1929_v1 = vor.u32 %v2855_v47, %v2863_v51  ;;  %v3287_v8 = vld [vmem:[#allocation33_spill] sm:$0xff] }
 0x141   : >> { %1010 = vmatpush.bf16.msra.mxu3 %v1735_v40  ;;  %997 = vmatpush.bf16.msra.mxu2 %v1731_v24  ;;  %v1703_v40 = vor.u32 %v3276_v3, %v3275_v4  ;;  %v3279_v24 = vld [vmem:[#allocation27_spill] sm:$0xff]  ;;  %v1917_v4 = vor.u32 %v2861_v58, %v2853_v37 }
 0x142   : >> { %971 = vmatpush.bf16.msra.mxu0 %v1723_v38  ;;  %984 = vmatpush.bf16.msra.mxu1 %v1727_v17  ;;  %v1691_v38 = vor.u32 %v3272_v39, %v2615_v50  ;;  %v3273_v17 = vld [vmem:[#allocation37_spill] sm:$0xff]  ;;  %v795_v39 = vld [vmem:[#allocation2] sm:$0xff] }
 0x143   : >> { %v1695_v0 = vor.u32 %v3274_v7, %v3273_v17  ;;  %v3283_v7 = vld [vmem:[#allocation32_spill] sm:$0xff] }
 0x145   : >> { %1011 = vmatpush.bf16.msra.mxu3 %v1719_v18  ;;  %998 = vmatpush.bf16.msra.mxu2 %v1715_v41  ;;  %v3284_v18 = vld [vmem:[#allocation28_spill] sm:$0xff] }
 0x146   : >> { %972 = vmatpush.bf16.msra.mxu0 %v1707_v42  ;;  %985 = vmatpush.bf16.msra.mxu1 %v1711_v59  ;;  %v1675_v42 = vor.u32 %v3280_v2, %v3279_v24  ;;  %v3281_v59 = vld [vmem:[#allocation30_spill] sm:$0xff]  ;;  %v1687_v3 = vor.u32 %v3284_v18, %v3283_v7  ;;  %v806_v2 = vpack.c.bf16 %v795_v39, %v795_v39  ;;  %v3291_v24 = vld [vmem:[#allocation111_spill] sm:$0xff]  ;;  %v3293_v7 = vld [vmem:[#allocation112_spill] sm:$0xff] }
 0x147   : >> { %v1679_v9 = vor.u32 %v3282_v6, %v3281_v59  ;;  %v3286_v6 = vld [vmem:[#allocation29_spill] sm:$0xff]  ;;  %v3292_v39 = vld [vmem:[#allocation115_spill] sm:$0xff]  ;;  %v3295_v18 = vld [vmem:[#allocation108_spill] sm:$0xff] }
 0x148   : >> { %v1683_v41 = vor.u32 %v3287_v8, %v3286_v6  ;;  %v3297_v6 = vld [vmem:[#allocation116_spill] sm:$0xff]  ;;  %v3298_v8 = vld [vmem:[#allocation107_spill] sm:$0xff] }
 0x149   : >> { %1012 = vmatpush.bf16.msra.mxu3 %v1703_v40  ;;  %999 = vmatpush.bf16.msra.mxu2 %v1699_v5  ;;  %v3289_v5 = vld [vmem:[#allocation119_spill] sm:$0xff]  ;;  %v3290_v40 = vld [vmem:[#allocation114_spill] sm:$0xff] }
 0x14a   : >> { %973 = vmatpush.bf16.msra.mxu0 %v1691_v38  ;;  %986 = vmatpush.bf16.msra.mxu1 %v1695_v0  ;;  %v1921_v0 = vor.u32 %v3285_v20, %v2859_v52  ;;  %v1901_v38 = vor.u32 %v2845_v62, %v2837_v57  ;;  %v1925_v17 = vor.u32 %v3289_v5, %v3288_v19  ;;  %v3299_v5 = vld [vmem:[#allocation103_spill] sm:$0xff] }
 0x14b   : >> { %v1905_v59 = vor.u32 %v3291_v24, %v3290_v40  ;;  %v1889_v40 = vor.u32 %v3299_v5, %v3298_v8  ;;  %v3300_v24 = vld [vmem:[#allocation109_spill] sm:$0xff] }
 0x14c   : >> { %v3308_v5 = vld [vmem:[#allocation101_spill] sm:$0xff] }
 0x14d   : >> { %1013 = vmatpush.bf16.msra.mxu3 %v1687_v3  ;;  %1000 = vmatpush.bf16.msra.mxu2 %v1683_v41  ;;  %v2319_v41 = vmov 0  }
 0x14e   : >> { %974 = vmatpush.bf16.msra.mxu0 %v1675_v42  ;;  %987 = vmatpush.bf16.msra.mxu1 %v1679_v9  ;;  %v1913_v42 = vor.u32 %v3293_v7, %v3292_v39  ;;  %v3294_v9 = vld [vmem:[#allocation104_spill] sm:$0xff]  ;;  %v3301_v39 = vld [vmem:[#allocation105_spill] sm:$0xff] }
 0x14f   : >> { %v1885_v3 = vor.u32 %v3295_v18, %v3294_v9  ;;  %v1897_v7 = vor.u32 %v3301_v39, %v3300_v24  ;;  %2120 = vset.pattern.permute.xlu0 %v2319_v41  ;;  %v3304_v18 = vld [vmem:[#allocation106_spill] sm:$0xff]  ;;  %v1881_v24 = vor.u32 %v3309_v10, %v3308_v5  ;;  %v3319_v10 = vld [vmem:[#allocation84_spill] sm:$0xff] }
 0x150   : >> { %1014 = vmatmul.bf16.vlgmr.msra.gmra.mxu3 %v806_v2  ;;  %1001 = vmatmul.bf16.vlgmr.msra.gmra.mxu2 %v806_v2  ;;  %v3313_v39 = vld [vmem:[#allocation102_spill] sm:$0xff] }
 0x151   : >> { %1230 = vmatpush.bf16.msrb.mxu3 %v1929_v1  ;;  %975 = vmatmul.bf16.vlgmr.msra.gmra.mxu0 %v806_v2  ;;  %v1381_v1 = vld [vmem:[%s1380_s26] sm:$0xff]  ;;  %s1416_s26 = scalar_lea.hbm (%p790_p9), %s3127_s6, %s2025_s12 }
 0x152   : >> { %1191 = vmatpush.bf16.msrb.mxu0 %v1917_v4  ;;  %1204 = vmatpush.bf16.msrb.mxu1 %v1921_v0  ;;  %v3296_v4 = vld [vmem:[#allocation113_spill] sm:$0xff] }
 0x153   : >> { %988 = vmatmul.bf16.vlgmr.msra.gmra.mxu1 %v806_v2  ;;  %1217 = vmatpush.bf16.msrb.mxu2 %v1925_v17  ;;  %v1909_v0 = vor.u32 %v3297_v6, %v3296_v4  ;;  %v3303_v17 = vld [vmem:[#allocation100_spill] sm:$0xff]  ;;  %v3305_v4 = vld [vmem:[#allocation110_spill] sm:$0xff] }
 0x154   : >> { %1385 = vperm.xlu0 %2120, %v1381_v1   ;;  %v1893_v6 = vor.u32 %v3305_v4, %v3304_v18  ;;  %v3310_v2 = vld [vmem:[#allocation88_spill] sm:$0xff]  ;;  %v3317_v18 = vld [vmem:[#allocation89_spill] sm:$0xff] }
 0x155   : >> { %1231 = vmatpush.bf16.msrb.mxu3 %v1913_v42  ;;  %v3307_v42 = vld [vmem:[#allocation95_spill] sm:$0xff]  ;;  %v3311_v1 = vld [vmem:[#allocation92_spill] sm:$0xff] }
 0x156   : >> { %1192 = vmatpush.bf16.msrb.mxu0 %v1901_v38  ;;  %1205 = vmatpush.bf16.msrb.mxu1 %v1905_v59  ;;  %v3302_v38 = vld [vmem:[#allocation96_spill] sm:$0xff]  ;;  %v3306_v59 = vld [vmem:[#allocation99_spill] sm:$0xff] }
 0x157   : >> { %1218 = vmatpush.bf16.msrb.mxu2 %v1909_v0  ;;  %v1869_v9 = vor.u32 %v3303_v17, %v3302_v38  ;;  %v1873_v8 = vor.u32 %v3307_v42, %v3306_v59  ;;  %v3312_v0 = vld [vmem:[#allocation98_spill] sm:$0xff]  ;;  %v3314_v38 = vld [vmem:[#allocation91_spill] sm:$0xff]  ;;  %v3318_v59 = vld [vmem:[#allocation80_spill] sm:$0xff] }
 0x158   : >> { %v1877_v41 = vor.u32 %v3313_v39, %v3312_v0  ;;  %v3315_v17 = vld [vmem:[#allocation87_spill] sm:$0xff]  ;;  %v3321_v42 = vld [vmem:[#allocation94_spill] sm:$0xff]  ;;  %v3325_v0 = vld [vmem:[#allocation81_spill] sm:$0xff] }
 0x159   : >> { %1232 = vmatpush.bf16.msrb.mxu3 %v1897_v7  ;;  %v3316_v7 = vld [vmem:[#allocation93_spill] sm:$0xff] }
 0x15a   : >> { %1193 = vmatpush.bf16.msrb.mxu0 %v1885_v3  ;;  %1206 = vmatpush.bf16.msrb.mxu1 %v1889_v40  ;;  %v1853_v3 = vor.u32 %v3311_v1, %v3310_v2  ;;  %v1857_v40 = vor.u32 %v3315_v17, %v3314_v38  ;;  %v1865_v4 = vor.u32 %v3317_v18, %v3316_v7  ;;  %v3322_v2 = vld [vmem:[#allocation83_spill] sm:$0xff]  ;;  %v3326_v38 = vld [vmem:[#allocation72_spill] sm:$0xff]  ;;  %v3329_v7 = vld [vmem:[#allocation86_spill] sm:$0xff] }
 0x15b   : >> { %1219 = vmatpush.bf16.msrb.mxu2 %v1893_v6  ;;  %v3320_v6 = vld [vmem:[#allocation90_spill] sm:$0xff]  ;;  %v3323_v1 = vld [vmem:[#allocation79_spill] sm:$0xff]  ;;  %v3327_v17 = vld [vmem:[#allocation76_spill] sm:$0xff] }
 0x15c   : >> { %v1861_v5 = vor.u32 %v3321_v42, %v3320_v6  ;;  %v3333_v6 = vld [vmem:[#allocation73_spill] sm:$0xff] }
 0x15d   : >> { %1233 = vmatpush.bf16.msrb.mxu3 %v1881_v24  ;;  %v3324_v24 = vld [vmem:[#allocation85_spill] sm:$0xff] }
 0x15e   : >> { %1194 = vmatpush.bf16.msrb.mxu0 %v1869_v9  ;;  %1207 = vmatpush.bf16.msrb.mxu1 %v1873_v8  ;;  %v1837_v9 = vor.u32 %v3319_v10, %v3318_v59  ;;  %v1841_v8 = vor.u32 %v3323_v1, %v3322_v2  ;;  %v1849_v39 = vor.u32 %v3325_v0, %v3324_v24  ;;  %v3330_v59 = vld [vmem:[#allocation75_spill] sm:$0xff]  ;;  %v3334_v2 = vld [vmem:[#allocation64_spill] sm:$0xff]  ;;  %v3336_v24 = vld [vmem:[#allocation74_spill] sm:$0xff] }
 0x15f   : >> { %1220 = vmatpush.bf16.msrb.mxu2 %v1877_v41  ;;  %v3328_v41 = vld [vmem:[#allocation82_spill] sm:$0xff]  ;;  %v3331_v10 = vld [vmem:[#allocation71_spill] sm:$0xff]  ;;  %v3335_v1 = vld [vmem:[#allocation68_spill] sm:$0xff] }
 0x160   : >> { %v1845_v18 = vor.u32 %v3329_v7, %v3328_v41  ;;  %v3337_v0 = vld [vmem:[#allocation78_spill] sm:$0xff]  ;;  %v3340_v41 = vld [vmem:[#allocation69_spill] sm:$0xff] }
 0x161   : >> { %1234 = vmatpush.bf16.msrb.mxu3 %v1865_v4  ;;  %v3332_v4 = vld [vmem:[#allocation77_spill] sm:$0xff] }
 0x162   : >> { %1195 = vmatpush.bf16.msrb.mxu0 %v1853_v3  ;;  %1208 = vmatpush.bf16.msrb.mxu1 %v1857_v40  ;;  %v1821_v3 = vor.u32 %v3327_v17, %v3326_v38  ;;  %v1825_v40 = vor.u32 %v3331_v10, %v3330_v59  ;;  %v1833_v42 = vor.u32 %v3333_v6, %v3332_v4  ;;  %v3341_v7 = vld [vmem:[#allocation65_spill] sm:$0xff]  ;;  %v3343_v10 = vld [vmem:[#allocation70_spill] sm:$0xff]  ;;  %v803_v6 = vld [vmem:[%s801_s21 + $0x8] sm:$0xff] }
 0x163   : >> { %1221 = vmatpush.bf16.msrb.mxu2 %v1861_v5  ;;  %v2997_v5 = vld [vmem:[#allocation4] sm:$0xff]  ;;  %v1829_v38 = vor.u32 %v3337_v0, %v3336_v24  ;;  %v1817_v59 = vor.u32 %v3341_v7, %v3340_v41 }
 0x165   : >> { %1235 = vmatpush.bf16.msrb.mxu3 %v1849_v39  ;;  %v3339_v39 = vld [vmem:[#allocation63_spill] sm:$0xff] }
 0x166   : >> { %1196 = vmatpush.bf16.msrb.mxu0 %v1837_v9  ;;  %1209 = vmatpush.bf16.msrb.mxu1 %v1841_v8  ;;  %v1805_v9 = vor.u32 %v3335_v1, %v3334_v2  ;;  %v3338_v8 = vld [vmem:[#allocation67_spill] sm:$0xff] }
 0x167   : >> { %1222 = vmatpush.bf16.msrb.mxu2 %v1845_v18  ;;  %v1809_v17 = vor.u32 %v3339_v39, %v3338_v8  ;;  %v3342_v18 = vld [vmem:[#allocation66_spill] sm:$0xff] }
 0x168   : >> { %v1813_v4 = vor.u32 %v3343_v10, %v3342_v18 }
 0x169   : >> { %1236 = vmatpush.bf16.msrb.mxu3 %v1833_v42 }
 0x16a   : >> { %1197 = vmatpush.bf16.msrb.mxu0 %v1821_v3  ;;  %1210 = vmatpush.bf16.msrb.mxu1 %v1825_v40  ;;  %v1030_v3 = vpack.c.bf16 %v2997_v5, %v2997_v5  ;;  %v802_v40 = vld [vmem:[%s801_s21] sm:$0xff] }
 0x16b   : >> { %1223 = vmatpush.bf16.msrb.mxu2 %v1829_v38  ;;  %v805_v38 = vld [vmem:[%s801_s21 + $0x18] sm:$0xff] }
 0x16d   : >> { %1237 = vmatpush.bf16.msrb.mxu3 %v1817_v59 }
 0x16e   : >> { %1198 = vmatpush.bf16.msrb.mxu0 %v1805_v9  ;;  %1211 = vmatpush.bf16.msrb.mxu1 %v1809_v17 }
 0x16f   : >> { %1224 = vmatpush.bf16.msrb.mxu2 %v1813_v4 }
 0x170   : >> { %1238 = vmatmul.bf16.vlgmr.msrb.gmra.mxu3 %v1030_v3 }
 0x171   : >> { %1199 = vmatmul.bf16.vlgmr.msrb.gmra.mxu0 %v1030_v3  ;;  %1212 = vmatmul.bf16.vlgmr.msrb.gmra.mxu1 %v1030_v3 }
 0x172   : >> { %1225 = vmatmul.bf16.vlgmr.msrb.gmra.mxu2 %v1030_v3 }
 0x1ce   : >> { %v976_v42 = vpop.f32.mrf.mxu0 }
 0x1cf   : >> { %v1019_v1 = vadd.f32 %v976_v42, %v802_v40  ;;  %v804_v40 = vld [vmem:[%s801_s21 + $0x10] sm:$0xff]  ;;  %s1419_s21 = sshll.u32 (%p790_p9), %s1416_s26, 4  ;;  %s1420_s21 = int_to_ptr.hbm [resolvable:$true] %s1419_s21 }
 0x1d0   : >> { %v989_v2 = vpop.f32.mrf.mxu1  ;;  %s2197_s23 = sshra.s32 (%p790_p9), %s1420_s21, 4  ;;  %s2198_s23 = int_to_ptr.hbm [resolvable:$true] %s2197_s23 }
 0x1d1   : >> { %v1020_v24 = vadd.f32 %v989_v2, %v803_v6  ;;  %v1930_v9 = vmul.f32 -1.442695, %v1019_v1  ;;  %s2199_s19 = scalar_lea.hbm (%p790_p9), %s2198_s23, 16  ;;  %p2204_p1 = scmp.lt.s32.totalorder (%p790_p9), %s2198_s23, %s3127_s6 }
 0x1d2   : > { %p2200_p10 = scmp.ne.s32.totalorder (%p790_p9), %s2198_s23, %s2199_s19  ;;  %p2205_p3 = scmp.lt.s32.totalorder (%p790_p9), %s2203_s20, %s2199_s19 }
 0x1d3   : >> { %v1931_v0 = vmul.f32 -1.442695, %v1020_v24  ;;  %2121 = vpow2.f32 %v1930_v9  ;;  %v1015_v8 = vpop.f32.mrf.mxu3  ;;  %v1002_v59 = vpop.f32.mrf.mxu2 }
 0x1d4   : >> { %v1022_v39 = vadd.f32 %v1015_v8, %v805_v38  ;;  %v1021_v2 = vadd.f32 %v1002_v59, %v804_v40  ;;  %p2201_p13 = pnand (%p790_p9), %p2200_p10, %p2421_p5  ;;  %p2206_p7 = por (%p790_p9), %p2205_p3, %p2204_p1 }
 0x1d5   : >> { %2123 = vpow2.f32 %v1931_v0 }
 0x1d6   : >> { %v978_v17 = vpop.f32.mrf.mxu0  ;;  %v1932_v7 = vmul.f32 -1.442695, %v1022_v39  ;;  %p2202_p0 = pneg (%p790_p9), %p2201_p13 }
 0x1d8   : >> { %v991_v41 = vpop.f32.mrf.mxu1  ;;  %2125 = vpow2.f32 %v1932_v7  ;;  %p2207_p2 = pnand (%p790_p9), %p2206_p7, %p2202_p0 }
 0x1d9   : >> { %v2122_v3 = vpop.eup %2121 }
 0x1da   : >> { %v1250_v10 = vadd.f32 1.0, %v2122_v3 }
 0x1db   : >> { %v2124_v18 = vpop.eup %2123  ;;  %v1017_v6 = vpop.f32.mrf.mxu3 }
 0x1dc   : >> { %v1269_v4 = vadd.f32 1.0, %v2124_v18  ;;  %2127 = vrcp.f32 %v1250_v10  ;;  %v1004_v1 = vpop.f32.mrf.mxu2  ;;  %vm1256_vm2 = vweird.f32 %v1250_v10  ;;  %v1262_v39 = vand.u32 2147483648, %v1250_v10 }
 0x1dd   : >> { %v1260_v7 = vand.u32 2147483647, %v1250_v10 }
 0x1de   : >> { %2129 = vrcp.f32 %v1269_v4  ;;  %v2126_v42 = vpop.eup %2125  ;;  %v1281_v41 = vand.u32 2147483648, %v1269_v4  ;;  %vm1275_vm4 = vweird.f32 %v1269_v4  ;;  %v1279_v59 = vand.u32 2147483647, %v1269_v4 }
 0x1df   : >> { %v3010_v24 = vadd.f32 1.0, %v2126_v42  ;;  %v1263_v42 = vor.u32 1.1754944e-38, %v1262_v39  ;;  %vm1261_vm8 = vcmp.eq.f32.partialorder %v1260_v7, 8.507059e+37  ;;  %v796_v39 = vld [vmem:[#allocation3] sm:$0xff] }
 0x1e0   : >> { %vm1280_vm9 = vcmp.eq.f32.partialorder %v1279_v59, 8.507059e+37 }
 0x1e1   : >> { %2131 = vrcp.f32 %v3010_v24  ;;  %vm1295_vm10 = vweird.f32 %v3010_v24  ;;  %v1301_v20 = vand.u32 2147483648, %v3010_v24 }
 0x1e2   : >> { %v2128_v9 = vpop.eup %2127  ;;  %2133 = vtanh.f32 %v1021_v2  ;;  %v1282_v2 = vor.u32 1.1754944e-38, %v1281_v41 }
 0x1e3   : >> { %v1252_v38 = vmul.f32 %v2128_v9, %v1250_v10  ;;  %vm1257_vm3 = vweird.f32 %v2128_v9  ;;  %v1026_v10 = vld [vmem:[%s3022_s10] sm:$0xff] }
 0x1e4   : >> { %v2130_v0 = vpop.eup %2129  ;;  %vm3014_vm6 = vmor %vm1256_vm2, %vm1257_vm3 }
 0x1e5   : >> { %v1271_v8 = vmul.f32 %v2130_v0, %v1269_v4  ;;  %v1253_v17 = vsub.f32 1.0, %v1252_v38  ;;  %vm1276_vm5 = vweird.f32 %v2130_v0 }
 0x1e6   : >> { %vm3018_vm7 = vmor %vm1275_vm4, %vm1276_vm5 }
 0x1e7   : >> { %v1272_v3 = vsub.f32 1.0, %v1271_v8  ;;  %v1254_v18 = vmul.f32 %v2128_v9, %v1253_v17  ;;  %v2132_v1 = vpop.eup %2131 }
 0x1e8   : >> { %v2134_v4 = vpop.eup %2133  ;;  %v1291_v8 = vmul.f32 %v2132_v1, %v3010_v24  ;;  %vm1296_vm11 = vweird.f32 %v2132_v1 }
 0x1e9   : >> { %v1273_v40 = vmul.f32 %v2130_v0, %v1272_v3  ;;  %v1255_v38 = vadd.f32 %v2128_v9, %v1254_v18  ;;  %v1027_v3 = vld [vmem:[%s3022_s10 + $0x8] sm:$0xff]  ;;  %vm3036_vm12 = vmor %vm1295_vm10, %vm1296_vm11 }
 0x1ea   : >> { %v1292_v18 = vsub.f32 1.0, %v1291_v8 }
 0x1eb   : >> { %v1274_v17 = vadd.f32 %v2130_v0, %v1273_v40  ;;  %v1259_v12 = vsel %vm3014_vm6, %v2128_v9, %v1255_v38  ;;  %v1299_v9 = vand.u32 2147483647, %v3010_v24 }
 0x1ec   : >> { %v1264_v7 = vsel %vm1261_vm8, %v1263_v42, %v1259_v12  ;;  %v1293_v19 = vmul.f32 %v2132_v1, %v1292_v18 }
 0x1ed   : >> { %v1278_v13 = vsel %vm3018_vm7, %v2130_v0, %v1274_v17  ;;  %v1306_v40 = vmul.f32 %v2134_v4, %v1264_v7  ;;  %vm1300_vm13 = vcmp.eq.f32.partialorder %v1299_v9, 8.507059e+37 }
 0x1ee   : >> { %v1200_v41 = vpop.f32.mrf.mxu0  ;;  %v1213_v15 = vpop.f32.mrf.mxu1  ;;  %v1283_v16 = vsel %vm1280_vm9, %v1282_v2, %v1278_v13  ;;  %v1294_v38 = vadd.f32 %v2132_v1, %v1293_v19  ;;  %v1029_v13 = vld [vmem:[%s3022_s10 + $0x18] sm:$0xff] }
 0x1ef   : >> { %v1243_v14 = vadd.f32 %v1200_v41, %v1026_v10  ;;  %v1244_v59 = vadd.f32 %v1213_v15, %v1027_v3  ;;  %v1305_v21 = vmul.f32 %v1283_v16, %v796_v39  ;;  %v1302_v15 = vor.u32 1.1754944e-38, %v1301_v20 }
 0x1f1   : >> { %v1933_v22 = vmul.f32 -1.442695, %v1243_v14  ;;  %v1934_v6 = vmul.f32 -1.442695, %v1244_v59  ;;  %v1307_v12 = vadd.f32 %v1306_v40, %v1305_v21  ;;  %v1298_v14 = vsel %vm3036_vm12, %v2132_v1, %v1294_v38  ;;  %v1028_v1 = vld [vmem:[%s3022_s10 + $0x10] sm:$0xff]  ;;  %s1400_s10 = scalar_lea.sflag (%p790_p9), [#allocation10], %s3350_s24 }
 0x1f2   : >> { %v1303_v21 = vsel %vm1300_vm13, %v1302_v15, %v1298_v14 }
 0x1f3   : >> { %2135 = vpow2.f32 %v1933_v22  ;;  %1374 = vst [vmem:[#allocation3] sm:$0xff] %v1307_v12  ;;  %v1239_v16 = vpop.f32.mrf.mxu3 }
 0x1f4   : >> { %2137 = vpow2.f32 %v1934_v6  ;;  %v1246_v19 = vadd.f32 %v1239_v16, %v1029_v13 }
 0x1f5   : >> { %2139 = vtanh.f32 %v1307_v12  ;;  %v1226_v22 = vpop.f32.mrf.mxu2 }
 0x1f6   : >> { %v1202_v24 = vpop.f32.mrf.mxu0  ;;  %v1215_v0 = vpop.f32.mrf.mxu1  ;;  %v1935_v42 = vmul.f32 -1.442695, %v1246_v19  ;;  %v1245_v18 = vadd.f32 %v1226_v22, %v1028_v1 }
 0x1f8   : >> { %2141 = vpow2.f32 %v1935_v42 }
 0x1f9   : >> { %v2136_v2 = vpop.eup %2135 }
 0x1fa   : >> { %v2138_v10 = vpop.eup %2137  ;;  %v1313_v4 = vadd.f32 1.0, %v2136_v2 }
 0x1fb   : >> { %v2140_v20 = vpop.eup %2139  ;;  %v1332_v8 = vadd.f32 1.0, %v2138_v10  ;;  %v1241_v3 = vpop.f32.mrf.mxu3 }
 0x1fc   : >> { %v1309_v17 = vmul.f32 %v2140_v20, %v1303_v21  ;;  %2143 = vrcp.f32 %v1313_v4  ;;  %v1325_v13 = vand.u32 2147483648, %v1313_v4  ;;  %v1323_v16 = vand.u32 2147483647, %v1313_v4  ;;  %v798_v20 = vld [vmem:[#allocation5] sm:$0xff] }
 0x1fd   : >> { %2145 = vrcp.f32 %v1332_v8  ;;  %v1228_v40 = vpop.f32.mrf.mxu2  ;;  %v1344_v14 = vand.u32 2147483648, %v1332_v8  ;;  %v1342_v24 = vand.u32 2147483647, %v1332_v8  ;;  %vm1319_vm0 = vweird.f32 %v1313_v4 }
 0x1fe   : >> { %1373 = vst [vmem:[#allocation2] sm:$0xff] %v1309_v17  ;;  %v1375_v39 = vpack.c.bf16 %v1309_v17, %v1309_v17  ;;  %v2142_v41 = vpop.eup %2141  ;;  %v1326_v22 = vor.u32 1.1754944e-38, %v1325_v13  ;;  %vm1338_vm2 = vweird.f32 %v1332_v8  ;;  %vm1324_vm3 = vcmp.eq.f32.partialorder %v1323_v16, 8.507059e+37 }
 0x1ff   : >> { %v1352_v7 = vadd.f32 1.0, %v2142_v41  ;;  %v1345_v1 = vor.u32 1.1754944e-38, %v1344_v14  ;;  %vm1343_vm5 = vcmp.eq.f32.partialorder %v1342_v24, 8.507059e+37 }
 0x200   : >> { %1378 = vst [vmem:[%s1377_s29] sm:$0xf] %v1375_v39 }
 0x201   : >> { %2147 = vrcp.f32 %v1352_v7  ;;  %v1364_v13 = vand.u32 2147483648, %v1352_v7  ;;  %vm1358_vm7 = vweird.f32 %v1352_v7 }
 0x202   : >> { %v2144_v59 = vpop.eup %2143  ;;  %2149 = vtanh.f32 %v1245_v18 }
 0x203   : >> { %v2146_v9 = vpop.eup %2145  ;;  %v1315_v6 = vmul.f32 %v2144_v59, %v1313_v4  ;;  %vm1320_vm14 = vweird.f32 %v2144_v59  ;;  %v1365_v16 = vor.u32 1.1754944e-38, %v1364_v13 }
 0x204   : >> { %v1334_v38 = vmul.f32 %v2146_v9, %v1332_v8  ;;  %vm1339_vm15 = vweird.f32 %v2146_v9  ;;  %vm1321_vm1 = vmor %vm1319_vm0, %vm1320_vm14 }
 0x205   : >> { %v1316_v11 = vsub.f32 1.0, %v1315_v6  ;;  %vm1340_vm4 = vmor %vm1338_vm2, %vm1339_vm15 }
 0x206   : >> { %v1335_v12 = vsub.f32 1.0, %v1334_v38 }
 0x207   : >> { %v1317_v15 = vmul.f32 %v2144_v59, %v1316_v11  ;;  %v2148_v0 = vpop.eup %2147  ;;  %v1386_v11 = vpop.permute.xlu0 %1385 }
 0x208   : >> { %v1336_v19 = vmul.f32 %v2146_v9, %v1335_v12  ;;  %v2150_v2 = vpop.eup %2149  ;;  %v1354_v21 = vmul.f32 %v2148_v0, %v1352_v7  ;;  %vm1359_vm6 = vweird.f32 %v2148_v0 }
 0x209   : >> { %v1318_v42 = vadd.f32 %v2144_v59, %v1317_v15  ;;  %vm1360_vm8 = vmor %vm1358_vm7, %vm1359_vm6 }
 0x20a   : >> { %v1337_v10 = vadd.f32 %v2146_v9, %v1336_v19  ;;  %v1355_v41 = vsub.f32 1.0, %v1354_v21 }
 0x20b   : >> { %v1322_v17 = vsel %vm1321_vm1, %v2144_v59, %v1318_v42  ;;  %v1362_v59 = vand.u32 2147483647, %v1352_v7 }
 0x20c   : >> { %v1327_v3 = vsel %vm1324_vm3, %v1326_v22, %v1322_v17  ;;  %v1341_v39 = vsel %vm1340_vm4, %v2146_v9, %v1337_v10  ;;  %v1356_v6 = vmul.f32 %v2148_v0, %v1355_v41 }
 0x20d   : >> { %v1346_v18 = vsel %vm1343_vm5, %v1345_v1, %v1341_v39  ;;  %v1369_v40 = vmul.f32 %v2150_v2, %v1327_v3  ;;  %vm1363_vm9 = vcmp.eq.f32.partialorder %v1362_v59, 8.507059e+37 }
 0x20e   : >> { %v1368_v38 = vmul.f32 %v1346_v18, %v798_v20  ;;  %v1357_v12 = vadd.f32 %v2148_v0, %v1356_v6 }
 0x210   : >> { %v1370_v4 = vadd.f32 %v1369_v40, %v1368_v38  ;;  %v1361_v9 = vsel %vm1360_vm8, %v2148_v0, %v1357_v12 }
 0x211   : >> { %v1366_v24 = vsel %vm1363_vm9, %v1365_v16, %v1361_v9 }
 0x212   : >> { %2151 = vtanh.f32 %v1370_v4  ;;  %v1390_v8 = vsub.f32 %v1370_v4, %v798_v20 }
 0x214   : >> { %v1391_v15 = vmul.f32 %v1390_v8, %v1386_v11 }
 0x216   : >> { %v1392_v14 = vadd.f32 %v1391_v15, %v798_v20 }
 0x218   : >> { %v2152_v19 = vpop.eup %2151  ;;  %1394 = vst [vmem:[#allocation5] sm:$0xff] %v1392_v14 }
 0x219   : >> { %v1372_v42 = vmul.f32 %v2152_v19, %v1366_v24 }
 0x21b   : >> { %v1382_v2 = vsub.f32 %v1372_v42, %v2997_v5 }
 0x21d   : >> { %v1388_v21 = vmul.f32 %v1386_v11, %v1382_v2 }
 0x21f   : >> { %v1389_v22 = vadd.f32 %v1388_v21, %v2997_v5  ;;  %792 = sbr.rel (!%p790_p9) target bundleno = 303 (0x12f), region = 126 }
 0x221   : >> { %1393 = vst [vmem:[#allocation4] sm:$0xff] %v1389_v22  ;;  %v1395_v7 = vpack.c.bf16 %v1389_v22, %v1389_v22 }
 0x223   : >> { %1398 = vst [vmem:[%s1397_s9] sm:$0xf] %v1395_v7 }
 0x224   : > { %2210 = shalt.err (!%p2207_p2)
}
 0x225   : > { %s2320_s16 = smov 64   ;;  %s2321_s11 = smov 4  }
 0x226   : > { %2031 = dma.vmem_to_hbm [thread:$0]  (%p2421_p5), %s1418_s14, 256, %s1420_s21, %s1400_s10, %s2320_s16, %s2320_s16, %s2321_s11  }
 0x227   : > { %s3351_s13 = ssub.s32 2, %s2398_s8  ;;  %s1435_s26 = sshll.u32 %s344_s27, 4  ;;  %s1436_s26 = int_to_ptr.vmem [resolvable:$true] %s1435_s26 }
 0x228   : > { %s2026_s4 = sshll.u32 %s3351_s13, 4  ;;  %s3352_s29 = sand.u32 1, %s2289_s25  }
 0x229   : > { %s1434_s23 = scalar_lea.hbm %s3128_s7, %s2026_s4  ;;  %s1405_s20 = scalar_lea.sflag [#allocation13], %s3352_s29 }
 0x22a   : > { %s1437_s19 = sshll.u32 %s1434_s23, 4  ;;  %s2231_s27 = scalar_lea.hbm %s3128_s7, 48  ;;  %s1438_s19 = int_to_ptr.hbm [resolvable:$true] %s1437_s19 }
 0x22b   : > { %s2225_s9 = sshra.s32 %s1438_s19, 4  ;;  %s2226_s9 = int_to_ptr.hbm [resolvable:$true] %s2225_s9 }
 0x22c   : > { %s2227_s12 = scalar_lea.hbm %s2226_s9, 16  ;;  %p2232_p9 = scmp.lt.s32.totalorder %s2226_s9, %s3128_s7 }
 0x22d   : > { %p2228_p4 = scmp.ne.s32.totalorder %s2226_s9, %s2227_s12  ;;  %p2233_p10 = scmp.lt.s32.totalorder %s2231_s27, %s2227_s12 }
 0x22f   : > { %p2229_p8 = pnand %p2228_p4, %p2444_p11  ;;  %p2234_p13 = por %p2233_p10, %p2232_p9 }
 0x231   : > { %p2230_p5 = pneg %p2229_p8 }
 0x233   : > { %p2235_p0 = pnand %p2234_p13, %p2230_p5 }
 0x235   : > { %2238 = shalt.err (!%p2235_p0)
}
 0x236   : > { %2032 = dma.vmem_to_hbm [thread:$0]  (%p2444_p11), %s1436_s26, 256, %s1438_s19, %s1405_s20, %s2320_s16, %s2320_s16, %s2321_s11  }
 0x237 PF: > { %s3353_s21 = sld [smem:[#allocation19_spill]]  ;;  %p2048_p1 = scmp.ge.s32.totalorder %s2309_s30, 2 }
 0x239   : > { %p2040_p3 = pnand %p2048_p1, %p2427_p6 }
 0x23b   : > { %p2041_p7 = pneg %p2040_p3 }
 0x23d   : > { %s1452_s13 = sand.u32 1, %s3353_s21  }
 0x23e   : > { %s1453_s4 = scalar_lea.sflag [#allocation10], %s1452_s13 }
 0x23f   : > { %2276 = dma.done.wait (%p2041_p7), %s1453_s4, 256  }
 0x240   : > { %2278 = vsyncadd (%p2041_p7), %s1453_s4, 4294967040  ;;  %s3355_s24 = sld [smem:[#allocation17_spill]]  ;;  %p2043_p2 = pnand %p2048_p1, %p2450_p12 }
 0x242   : > { %p2044_p4 = pneg %p2043_p2 }
 0x246   : > { %s1462_s23 = sand.u32 1, %s3355_s24  }
 0x247   : > { %s1463_s22 = scalar_lea.sflag [#allocation13], %s1462_s23 }
 0x248   : > { %2280 = dma.done.wait (%p2044_p4), %s1463_s22, 256  }
 0x249   : > { %2282 = vsyncadd (%p2044_p4), %s1463_s22, 4294967040  ;;  %s3357_s30 = sld [smem:[#allocation21_spill]]  ;;  %s3362_s24 = smov %s2289_s25 }
 0x24a   : > { %s3358_s16 = sld [smem:[#allocation18_spill]]  ;;  %s3364_s27 = smov %s2301_s28 }
 0x24b   : > { %s3359_s26 = sld [smem:[#allocation24_spill]] }
 0x24c   : > { %s3360_s11 = sld [smem:[#allocation20_spill]] }
 0x24d   : > { %s3361_s29 = sld [smem:[#allocation22_spill]] }
 0x24f   : > { %p22_p6 = scmp.ge.s32.totalorder %s3357_s30, 5  }
 0x250   : > { %s3363_s25 = smov %s3358_s16 }
 0x251   :  { %24 = sbr.rel (!%p22_p6) target bundleno = 10 (0xa), region = 137 }
 0x252   : > { %s3365_s28 = smov %s3360_s11 }
 0x256   :  { %1469 = vsyncpa [#allocation9], 1 }
 0x257   :  { %1471 = vsyncpa [#allocation9 + $0x1], 1 }
 0x258   :  { %1472 = vsyncpa [#allocation10], 1 }
 0x259   :  { %1474 = vsyncpa [#allocation10 + $0x1], 1 }
 0x25a   :  { %1475 = vsyncpa [#allocation13], 1 }
 0x25b   :  { %1477 = vsyncpa [#allocation13 + $0x1], 1 }

</bundles_post_ra>
